<compile_context>
chip_gen: v7x
topology: tpu7x:2x2x1
jax: 0.10.0
libtpu: 0.0.40
codegen_flags: <defaults>
</compile_context>

<pallas_src>
import math
import functools
import numpy as np

import jax
import jax.numpy as jnp
from jax import lax
from jax.experimental import pallas as pl
from jax.experimental.pallas import tpu as pltpu

VMEM_LIMIT = 32 * 1024 * 1024   # explicit scoped-VMEM limit (safe on v5e/v6e/v7x)


# ----------------------------------------------------------------------------------
# Host-side (numpy, float64) operator folding
# ----------------------------------------------------------------------------------

def _spectral_operator(h, ck, wr, wi, l):
    """(h*ck, h*ck) real operator for a flat (pos-major, channel-flat) signal:
    irfft_n=h( pad( weights[:, :, :l] * rfft(signal)[:l] ) ), matching
    torch sparseKernelFT1d (norm='backward'; Im dropped at DC/Nyquist bins)."""
    M = np.zeros((h * ck, h * ck), dtype=np.float64)
    pos = np.arange(h)
    for m in range(l):
        ang = 2.0 * np.pi * m * pos / h
        cosv, sinv = np.cos(ang), np.sin(ang)
        special = (m == 0) or (h % 2 == 0 and m == h // 2)
        cm = 1.0 if special else 2.0
        drop = 0.0 if special else 1.0
        wrm = wr[:, :, m].astype(np.float64)
        wim = wi[:, :, m].astype(np.float64)
        term = (np.einsum('p,ao,q->paqo', cosv, wrm, cosv)
                + np.einsum('p,ao,q->paqo', sinv, wim, cosv)
                - drop * np.einsum('p,ao,q->paqo', cosv, wim, sinv)
                + drop * np.einsum('p,ao,q->paqo', sinv, wrm, sinv))
        M += (cm / h) * term.reshape(h * ck, h * ck)
    return M


def _decomp_operator(n, c, k, ec_d, ec_s, a_w, b_w, c_w, alpha):
    """(n*ck, 3*h*ck): flat x -> [Ud | Us | s] for one MWT_CZ1d decomposition level."""
    ck = c * k
    h = n // 2
    l = min(alpha, h // 2 + 1)
    e_d = np.zeros((n * ck, h * ck), dtype=np.float64)
    e_s = np.zeros((n * ck, h * ck), dtype=np.float64)
    for p in range(h):
        for cc in range(c):
            for i in range(2 * k):
                q = 2 * p + (0 if i < k else 1)
                src = q * ck + cc * k + (i if i < k else i - k)
                dst = p * ck + cc * k
                e_d[src, dst:dst + k] += ec_d[i, :]
                e_s[src, dst:dst + k] += ec_s[i, :]
    s_a = _spectral_operator(h, ck, a_w[0], a_w[1], l)
    s_b = _spectral_operator(h, ck, b_w[0], b_w[1], l)
    s_c = _spectral_operator(h, ck, c_w[0], c_w[1], l)
    return np.concatenate([e_d @ s_a + e_s @ s_b,     # Ud = A(d) + B(s)
                           e_d @ s_c,                 # Us = C(d)
                           e_s], axis=1)              # s carried to the next level


def _recon_operator(h, c, k, rc_e, rc_o):
    """(2*h*ck, 2*h*ck): [x | Ud] flat -> evenOdd(cat((x, Ud), -1)) flat."""
    ck = c * k
    R = np.zeros((2 * h * ck, 2 * h * ck), dtype=np.float64)
    for p in range(h):
        for cc in range(c):
            for i in range(2 * k):
                if i < k:
                    src = p * ck + cc * k + i
                else:
                    src = h * ck + p * ck + cc * k + (i - k)
                de = (2 * p) * ck + cc * k
                do = (2 * p + 1) * ck + cc * k
                R[src, de:de + k] += rc_e[i, :]
                R[src, do:do + k] += rc_o[i, :]
    return R


def _block_diag(block, copies):
    r, cdim = block.shape
    out = np.zeros((copies * r, copies * cdim), dtype=np.float64)
    for i in range(copies):
        out[i * r:(i + 1) * r, i * cdim:(i + 1) * cdim] = block
    return out


def build_params(seed, *, num_heads, ich, k, alpha, c, L_level, seq_len):
    """Builds raw module parameters (numpy) and the folded Pallas operands."""
    rng = np.random.default_rng(seed)
    ck = c * k
    # The reference module only type-checks when the wavelet output feeds the
    # c*k-dim attention, i.e. ich == c*k (and H*E == ich).
    assert ich == ck and ck % num_heads == 0
    N = seq_len
    ns = int(math.floor(math.log2(N)))
    nl = 2 ** int(math.ceil(math.log2(N)))
    n_lev = ns - L_level
    assert n_lev >= 1

    def linear(i_d, o_d):
        lim = 1.0 / math.sqrt(i_d)
        return rng.uniform(-lim, lim, (i_d, o_d)), rng.uniform(-lim, lim, (o_d,))

    # get_filter('legendre', k): random stand-ins (as in the spec); scaled ~1/sqrt(2k)
    # so magnitudes stay O(1) like real orthonormal wavelet filters.
    fs = 1.0 / math.sqrt(2 * k)
    H0, H1, G0, G1, PHI0, PHI1 = (fs * rng.standard_normal((k, k)) for _ in range(6))
    H0r, G0r, H1r, G1r = H0 @ PHI0, G0 @ PHI0, H1 @ PHI1, G1 @ PHI1
    for m in (H0r, G0r, H1r, G1r):
        m[np.abs(m) < 1e-8] = 0.0
    ec_d = np.concatenate([G0.T, G1.T], axis=0)        # (2k, k)
    ec_s = np.concatenate([H0.T, H1.T], axis=0)
    rc_e = np.concatenate([H0r, G0r], axis=0)
    rc_o = np.concatenate([H1r, G1r], axis=0)

    # sparseKernelFT1d complex weights: scale * rand, mode axis last
    scale = 1.0 / (ck * ck)
    def spec_w():
        return (scale * rng.random((ck, ck, alpha)), scale * rng.random((ck, ck, alpha)))
    a_w, b_w, c_w = spec_w(), spec_w(), spec_w()

    lk0_w, lk0_b = linear(ich, ck)
    lk1_w, lk1_b = linear(ck, ich)
    t0_w, t0_b = linear(k, k)
    q_w, q_b = linear(ck, ck)
    kk_w, kk_b = linear(ck, ck)
    v_w, v_b = linear(ck, ck)
    out_w, out_b = linear(ck, ck)
    fin_w, fin_b = linear(ck, ich)

    # ----- fold: per-position Lk0 + circular pad (x -> x[:nl]) -----
    pad = np.zeros((N * ck, nl * ck), dtype=np.float64)
    pad[np.arange(N * ck), np.arange(N * ck)] = 1.0
    for q in range(N, nl):
        src = (q - N) * ck
        pad[src:src + ck, q * ck:(q + 1) * ck] += np.eye(ck)
    w_pre = _block_diag(lk0_w, N) @ pad                      # (N*ich, nl*ck)
    b_pre = np.tile(lk0_b, N)[None, :] @ pad                 # (1, nl*ck)

    # ----- fold: one operator per decomposition / reconstruction level -----
    w_dec, w_rec = [], []
    n = nl
    for _ in range(n_lev):
        w_dec.append(_decomp_operator(n, c, k, ec_d, ec_s, a_w, b_w, c_w, alpha))
        h = n // 2
        w_rec.append(_recon_operator(h, c, k, rc_e, rc_o))
        n = h
    n_f = nl // (2 ** n_lev)
    w_t0 = _block_diag(t0_w, n_f * c)                        # (n_f*ck, n_f*ck)
    b_t0 = np.tile(np.tile(t0_b, c), n_f)[None, :]           # (1, n_f*ck)

    # ----- fold: Lk1 into the fused q|k|v projection; bf16 attention weights -----
    w_qkv = np.concatenate([q_w, kk_w, v_w], axis=1)         # (ich, 3ck)
    b_qkv = np.concatenate([q_b, kk_b, v_b], axis=0)
    w_qkv_eff = lk1_w @ w_qkv                                # (ck, 3ck)
    b_qkv_eff = lk1_b @ w_qkv + b_qkv                        # (3ck,)
    dh = ck // num_heads
    w_out3 = out_w.reshape(num_heads, dh, ck)                # head-batched out proj

    f32 = lambda a: jnp.asarray(a, jnp.float32)
    bf16 = lambda a: jnp.asarray(a, jnp.bfloat16)
    params = dict(
        w_pre=f32(w_pre), b_pre=f32(b_pre),
        w_dec=tuple(f32(m) for m in w_dec),
        w_t0=f32(w_t0), b_t0=f32(b_t0),
        w_rec=tuple(f32(m) for m in w_rec),
        w_qkv=bf16(w_qkv_eff), b_qkv=f32(b_qkv_eff[None, :]),
        w_out3=bf16(w_out3), b_out=f32(out_b[None, :]),
        w_fin=bf16(fin_w), b_fin=f32(fin_b[None, :]),
    )
    raw = dict(lk0_w=lk0_w, lk0_b=lk0_b, lk1_w=lk1_w, lk1_b=lk1_b,
               ec_d=ec_d, ec_s=ec_s, rc_e=rc_e, rc_o=rc_o,
               t0_w=t0_w, t0_b=t0_b,
               A_r=a_w[0], A_i=a_w[1], B_r=b_w[0], B_i=b_w[1], C_r=c_w[0], C_i=c_w[1],
               q_w=q_w, q_b=q_b, k_w=kk_w, k_b=kk_b, v_w=v_w, v_b=v_b,
               out_w=out_w, out_b=out_b, fin_w=fin_w, fin_b=fin_b)
    meta = dict(num_heads=num_heads, ich=ich, ck=ck, c=c, k=k, alpha=alpha,
                L_level=L_level, nl=nl, n_lev=n_lev, seq_len=N)
    return params, raw, meta


# ----------------------------------------------------------------------------------
# Kernel 1: full MultiWaveletTransform (Lk0 + MWT_CZ1d + T0), single launch
# ----------------------------------------------------------------------------------

def _make_wavelet_kernel(n_lev, ck, nl, seq_len):
    def kernel(*refs):
        x_ref, wpre, bpre = refs[0], refs[1], refs[2]
        wdec = refs[3:3 + n_lev]
        wt0, bt0 = refs[3 + n_lev], refs[4 + n_lev]
        wrec = refs[5 + n_lev:5 + 2 * n_lev]
        out_ref = refs[5 + 2 * n_lev]

        # Lk0 (+ circular pad), folded host-side into one lane-dense matmul.
        x = jnp.dot(x_ref[...], wpre[...], preferred_element_type=jnp.float32) + bpre[...]

        ud, us = [], []
        n = nl
        for i in range(n_lev):                       # decomposition levels
            h = n // 2
            o = jnp.dot(x, wdec[i][...], preferred_element_type=jnp.float32)
            ud.append(o[:, :h * ck])                 # A(d) + B(s)
            us.append(o[:, h * ck:2 * h * ck])       # C(d)
            x = o[:, 2 * h * ck:]                    # s -> next level
            n = h

        x = jnp.dot(x, wt0[...], preferred_element_type=jnp.float32) + bt0[...]

        for i in range(n_lev - 1, -1, -1):           # reconstruction levels
            xin = jnp.concatenate([x + us[i], ud[i]], axis=1)
            x = jnp.dot(xin, wrec[i][...], preferred_element_type=jnp.float32)

        out_ref[...] = x[:, :seq_len * ck]
    return kernel


def wavelet_transform_pallas(x_flat, params, meta):
    B = x_flat.shape[0]
    ck, nl, n_lev, seq_len = meta['ck'], meta['nl'], meta['n_lev'], meta['seq_len']
    kernel = _make_wavelet_kernel(n_lev, ck, nl, seq_len)
    args = (x_flat, params['w_pre'], params['b_pre'], *params['w_dec'],
            params['w_t0'], params['b_t0'], *params['w_rec'])
    # Single grid step, batch folded into the block; all operands live in VMEM.
    return pl.pallas_call(
        kernel,
        out_shape=jax.ShapeDtypeStruct((B, seq_len * ck), jnp.float32),
        compiler_params=pltpu.CompilerParams(vmem_limit_bytes=VMEM_LIMIT),
    )(*args)


# ----------------------------------------------------------------------------------
# Kernel 2: Lk1 (folded) + MultiHeadSelfAttention + final nn.Linear
# ----------------------------------------------------------------------------------

def _attention_kernel(x_ref, wqkv_ref, bqkv_ref, wout_ref, bout_ref, wfin_ref, bfin_ref,
                      o_ref, *, num_heads, inv_scale):
    L, ck = x_ref.shape[1], x_ref.shape[2]
    dh = ck // num_heads
    x = x_ref[0]                                                    # (L, ck) f32

    # fused Lk1 + q|k|v projection (weights folded host-side; bf16 operands, f32 acc)
    qkv = (jnp.dot(x.astype(jnp.bfloat16), wqkv_ref[...],
                   preferred_element_type=jnp.float32) + bqkv_ref[...])   # (L, 3ck)

    def heads(base):
        return jnp.stack([qkv[:, base + h * dh:base + (h + 1) * dh]
                          for h in range(num_heads)], axis=0)             # (H, L, dh)

    q3 = heads(0).astype(jnp.bfloat16)
    k3 = heads(ck).astype(jnp.bfloat16)
    v3 = heads(2 * ck).astype(jnp.bfloat16)

    # head-batched attention (one dot_general per stage, no per-head Python loop)
    scores = lax.dot_general(q3, k3, (((2,), (2,)), ((0,), (0,))),
                             preferred_element_type=jnp.float32) * inv_scale   # (H, L, L)
    scores = scores - jnp.max(scores, axis=-1, keepdims=True)
    p = jnp.exp(scores)
    p = p / jnp.sum(p, axis=-1, keepdims=True)       # exact f32 softmax (matches reference)
    # TODO(synk): attention dropout is identity (inference mode).
    ctx = lax.dot_general(p.astype(jnp.bfloat16), v3, (((2,), (1,)), ((0,), (0,))),
                          preferred_element_type=jnp.float32)                  # (H, L, dh)
    # combine_heads + out-projection fused: sum_h ctx_h @ W_out[h]
    proj = lax.dot_general(ctx.astype(jnp.bfloat16), wout_ref[...],
                           (((2,), (1,)), ((0,), (0,))),
                           preferred_element_type=jnp.float32)                 # (H, L, ck)
    attn = jnp.sum(proj, axis=0) + bout_ref[...]                               # (L, ck)
    # final nn.Linear(c*k, ich)
    o_ref[0] = (jnp.dot(attn.astype(jnp.bfloat16), wfin_ref[...],
                        preferred_element_type=jnp.float32) + bfin_ref[...])


def attention_block_pallas(v3, params, meta):
    B, L, ck = v3.shape
    num_heads, ich = meta['num_heads'], meta['ich']
    dh = ck // num_heads
    inv_scale = 1.0 / math.sqrt(dh)
    kern = functools.partial(_attention_kernel, num_heads=num_heads, inv_scale=inv_scale)

    def const(shape):
        zeros = (0,) * len(shape)
        return pl.BlockSpec(shape, lambda b: zeros)

    return pl.pallas_call(
        kern,
        out_shape=jax.ShapeDtypeStruct((B, L, ich), jnp.float32),
        grid=(B,),
        in_specs=[pl.BlockSpec((1, L, ck), lambda b: (b, 0, 0)),
                  const((ck, 3 * ck)), const((1, 3 * ck)),
                  const((num_heads, dh, ck)), const((1, ck)),
                  const((ck, ich)), const((1, ich))],
        out_specs=pl.BlockSpec((1, L, ich), lambda b: (b, 0, 0)),
        compiler_params=pltpu.CompilerParams(
            dimension_semantics=("parallel",), vmem_limit_bytes=VMEM_LIMIT),
    )(v3, params['w_qkv'], params['b_qkv'], params['w_out3'], params['b_out'],
      params['w_fin'], params['b_fin'])


# ----------------------------------------------------------------------------------
# Full forward
# ----------------------------------------------------------------------------------

def multiwavelet_mhsa_forward(x, params, meta):
    B, L, H, E = x.shape
    ck = meta['ck']
    x_flat = x.reshape(B, L * H * E).astype(jnp.float32)
    v_flat = wavelet_transform_pallas(x_flat, params, meta)        # (B, L*ck) lane-dense
    v3 = v_flat.reshape(B, L, ck)
    out = attention_block_pallas(v3, params, meta)                 # (B, L, ich)
    return out, None


# ----------------------------------------------------------------------------------
# Pure-JAX reference (mirrors the PyTorch module, f32) for a sanity check
# ----------------------------------------------------------------------------------

def reference_forward(x, raw, meta):
    c, k, alpha, L_level = meta['c'], meta['k'], meta['alpha'], meta['L_level']
    num_heads, ich, ck = meta['num_heads'], meta['ich'], meta['ck']
    B, L, H, E = x.shape
    N = L
    xf = x.reshape(B, L, H * E)
    V = xf @ raw['lk0_w'] + raw['lk0_b']
    V = V.reshape(B, L, c, k)
    ns = int(math.floor(math.log2(N)))
    nl = 2 ** int(math.ceil(math.log2(N)))
    if nl > N:
        V = jnp.concatenate([V, V[:, :nl - N]], axis=1)

    def spectral(u, wr, wi):
        Bn, n = u.shape[0], u.shape[1]
        uf = u.reshape(Bn, n, ck).transpose(0, 2, 1)
        uhat = jnp.fft.rfft(uf, axis=-1)
        lm = min(alpha, n // 2 + 1)
        w = jnp.asarray(wr[:, :, :lm] + 1j * wi[:, :, :lm], jnp.complex64)
        mixed = jnp.einsum('bix,iox->box', uhat[:, :, :lm], w)
        out_ft = jnp.zeros((Bn, ck, n // 2 + 1), jnp.complex64).at[:, :, :lm].set(mixed)
        v = jnp.fft.irfft(out_ft, n=n, axis=-1)
        return v.transpose(0, 2, 1).reshape(Bn, n, c, k)

    Ud, Us = [], []
    xw = V
    for _ in range(ns - L_level):
        xa = jnp.concatenate([xw[:, ::2], xw[:, 1::2]], axis=-1)
        d = xa @ raw['ec_d']
        s = xa @ raw['ec_s']
        Ud.append(spectral(d, raw['A_r'], raw['A_i']) + spectral(s, raw['B_r'], raw['B_i']))
        Us.append(spectral(d, raw['C_r'], raw['C_i']))
        xw = s
    xw = xw @ raw['t0_w'] + raw['t0_b']
    for i in range(ns - 1 - L_level, -1, -1):
        xw = xw + Us[i]
        xc = jnp.concatenate([xw, Ud[i]], axis=-1)
        xe = xc @ raw['rc_e']
        xo = xc @ raw['rc_o']
        n2 = xe.shape[1]
        xw = jnp.stack([xe, xo], axis=2).reshape(B, 2 * n2, c, k)
    xw = xw[:, :N]
    wav = xw.reshape(B, N, ck) @ raw['lk1_w'] + raw['lk1_b']

    dh = ck // num_heads
    def split(t):
        return t.reshape(B, N, num_heads, dh).transpose(0, 2, 1, 3)
    q = split(wav @ raw['q_w'] + raw['q_b'])
    kk = split(wav @ raw['k_w'] + raw['k_b'])
    v = split(wav @ raw['v_w'] + raw['v_b'])
    sc = jnp.einsum('bhqd,bhkd->bhqk', q, kk) / math.sqrt(dh)
    w_att = jax.nn.softmax(sc, axis=-1)
    ctx = jnp.einsum('bhqk,bhkd->bhqd', w_att, v)
    ctx = ctx.transpose(0, 2, 1, 3).reshape(B, N, ck)
    attn = ctx @ raw['out_w'] + raw['out_b']
    return attn @ raw['fin_w'] + raw['fin_b']


# ----------------------------------------------------------------------------------
# Demo
# ----------------------------------------------------------------------------------

if __name__ == "__main__":
    num_heads, k, alpha, c, L_level = 4, 4, 4, 8, 0
    ich = c * k                # 32 (reference requires ich == c*k and H*E == ich)
    B, seq_len, H, E = 2, 8, 1, ich

    params, raw, meta = build_params(
        0, num_heads=num_heads, ich=ich, k=k, alpha=alpha, c=c,
        L_level=L_level, seq_len=seq_len)
    x = jax.random.normal(jax.random.PRNGKey(0), (B, seq_len, H, E), jnp.float32)

    fwd = jax.jit(lambda xx: multiwavelet_mhsa_forward(xx, params, meta))
    out, attn_none = fwd(x)
    out = jax.block_until_ready(out)
    assert out.shape == (B, seq_len, ich) and attn_none is None
    assert bool(jnp.all(jnp.isfinite(out)))

    # sanity check against a pure-JAX re-implementation of the module's math
    # (tolerance covers bf16 attention operands + folded-operator rounding).
    ref = reference_forward(x, raw, meta)
    assert bool(jnp.allclose(out, ref, rtol=3e-2, atol=3e-2))

    print("KERNEL_OK")
</pallas_src>

<mosaic_0001>
module attributes {stable_mosaic.version = 11 : i64} {
  func.func @kernel(%arg0: memref<2x256xf32, #tpu.memory_space<vmem>>, %arg1: memref<256x256xf32, #tpu.memory_space<vmem>>, %arg2: memref<1x256xf32, #tpu.memory_space<vmem>>, %arg3: memref<256x384xf32, #tpu.memory_space<vmem>>, %arg4: memref<128x192xf32, #tpu.memory_space<vmem>>, %arg5: memref<64x96xf32, #tpu.memory_space<vmem>>, %arg6: memref<32x32xf32, #tpu.memory_space<vmem>>, %arg7: memref<1x32xf32, #tpu.memory_space<vmem>>, %arg8: memref<256x256xf32, #tpu.memory_space<vmem>>, %arg9: memref<128x128xf32, #tpu.memory_space<vmem>>, %arg10: memref<64x64xf32, #tpu.memory_space<vmem>>, %arg11: memref<2x256xf32, #tpu.memory_space<vmem>>) attributes {dimension_semantics = [], scalar_prefetch = 0 : i64, scratch_operands = 0 : i64, tpu.core_type = #tpu.core_type<tc>} {
    %c0 = arith.constant 0 : index
    %c0_0 = arith.constant 0 : index
    %0 = vector.load %arg0[%c0, %c0_0] : memref<2x256xf32, #tpu.memory_space<vmem>>, vector<2x256xf32>
    %c0_1 = arith.constant 0 : index
    %c0_2 = arith.constant 0 : index
    %1 = vector.load %arg1[%c0_1, %c0_2] : memref<256x256xf32, #tpu.memory_space<vmem>>, vector<256x256xf32>
    %cst = arith.constant dense<0.000000e+00> : vector<2x256xf32>
    %2 = tpu.matmul %0, %1, %cst {dimension_numbers = #tpu.dot_dimension_numbers<[1], [0], [0], [1], [0, 0, 1, 1], [], []>} : vector<2x256xf32>, vector<256x256xf32>, vector<2x256xf32> -> vector<2x256xf32>
    %c0_3 = arith.constant 0 : index
    %c0_4 = arith.constant 0 : index
    %3 = vector.load %arg2[%c0_3, %c0_4] : memref<1x256xf32, #tpu.memory_space<vmem>>, vector<1x256xf32>
    %4 = vector.broadcast %3 : vector<1x256xf32> to vector<2x256xf32>
    %5 = arith.addf %2, %4 : vector<2x256xf32>
    %c0_5 = arith.constant 0 : index
    %c0_6 = arith.constant 0 : index
    %6 = vector.load %arg3[%c0_5, %c0_6] : memref<256x384xf32, #tpu.memory_space<vmem>>, vector<256x384xf32>
    %cst_7 = arith.constant dense<0.000000e+00> : vector<2x384xf32>
    %7 = tpu.matmul %5, %6, %cst_7 {dimension_numbers = #tpu.dot_dimension_numbers<[1], [0], [0], [1], [0, 0, 1, 1], [], []>} : vector<2x256xf32>, vector<256x384xf32>, vector<2x384xf32> -> vector<2x384xf32>
    %8 = vector.extract_strided_slice %7 {offsets = [0, 0], sizes = [2, 128], strides = [1, 1]} : vector<2x384xf32> to vector<2x128xf32>
    %9 = vector.extract_strided_slice %7 {offsets = [0, 128], sizes = [2, 128], strides = [1, 1]} : vector<2x384xf32> to vector<2x128xf32>
    %10 = vector.extract_strided_slice %7 {offsets = [0, 256], sizes = [2, 128], strides = [1, 1]} : vector<2x384xf32> to vector<2x128xf32>
    %c0_8 = arith.constant 0 : index
    %c0_9 = arith.constant 0 : index
    %11 = vector.load %arg4[%c0_8, %c0_9] : memref<128x192xf32, #tpu.memory_space<vmem>>, vector<128x192xf32>
    %cst_10 = arith.constant dense<0.000000e+00> : vector<2x192xf32>
    %12 = tpu.matmul %10, %11, %cst_10 {dimension_numbers = #tpu.dot_dimension_numbers<[1], [0], [0], [1], [0, 0, 1, 1], [], []>} : vector<2x128xf32>, vector<128x192xf32>, vector<2x192xf32> -> vector<2x192xf32>
    %13 = vector.extract_strided_slice %12 {offsets = [0, 0], sizes = [2, 64], strides = [1, 1]} : vector<2x192xf32> to vector<2x64xf32>
    %14 = vector.extract_strided_slice %12 {offsets = [0, 64], sizes = [2, 64], strides = [1, 1]} : vector<2x192xf32> to vector<2x64xf32>
    %15 = vector.extract_strided_slice %12 {offsets = [0, 128], sizes = [2, 64], strides = [1, 1]} : vector<2x192xf32> to vector<2x64xf32>
    %c0_11 = arith.constant 0 : index
    %c0_12 = arith.constant 0 : index
    %16 = vector.load %arg5[%c0_11, %c0_12] : memref<64x96xf32, #tpu.memory_space<vmem>>, vector<64x96xf32>
    %cst_13 = arith.constant dense<0.000000e+00> : vector<2x96xf32>
    %17 = tpu.matmul %15, %16, %cst_13 {dimension_numbers = #tpu.dot_dimension_numbers<[1], [0], [0], [1], [0, 0, 1, 1], [], []>} : vector<2x64xf32>, vector<64x96xf32>, vector<2x96xf32> -> vector<2x96xf32>
    %18 = vector.extract_strided_slice %17 {offsets = [0, 0], sizes = [2, 32], strides = [1, 1]} : vector<2x96xf32> to vector<2x32xf32>
    %19 = vector.extract_strided_slice %17 {offsets = [0, 32], sizes = [2, 32], strides = [1, 1]} : vector<2x96xf32> to vector<2x32xf32>
    %20 = vector.extract_strided_slice %17 {offsets = [0, 64], sizes = [2, 32], strides = [1, 1]} : vector<2x96xf32> to vector<2x32xf32>
    %c0_14 = arith.constant 0 : index
    %c0_15 = arith.constant 0 : index
    %21 = vector.load %arg6[%c0_14, %c0_15] : memref<32x32xf32, #tpu.memory_space<vmem>>, vector<32x32xf32>
    %cst_16 = arith.constant dense<0.000000e+00> : vector<2x32xf32>
    %22 = tpu.matmul %20, %21, %cst_16 {dimension_numbers = #tpu.dot_dimension_numbers<[1], [0], [0], [1], [0, 0, 1, 1], [], []>} : vector<2x32xf32>, vector<32x32xf32>, vector<2x32xf32> -> vector<2x32xf32>
    %c0_17 = arith.constant 0 : index
    %c0_18 = arith.constant 0 : index
    %23 = vector.load %arg7[%c0_17, %c0_18] : memref<1x32xf32, #tpu.memory_space<vmem>>, vector<1x32xf32>
    %24 = vector.broadcast %23 : vector<1x32xf32> to vector<2x32xf32>
    %25 = arith.addf %22, %24 : vector<2x32xf32>
    %26 = arith.addf %25, %19 : vector<2x32xf32>
    %27 = tpu.concatenate %26, %18 in 1 : vector<2x32xf32>, vector<2x32xf32> -> vector<2x64xf32>
    %c0_19 = arith.constant 0 : index
    %c0_20 = arith.constant 0 : index
    %28 = vector.load %arg10[%c0_19, %c0_20] : memref<64x64xf32, #tpu.memory_space<vmem>>, vector<64x64xf32>
    %cst_21 = arith.constant dense<0.000000e+00> : vector<2x64xf32>
    %29 = tpu.matmul %27, %28, %cst_21 {dimension_numbers = #tpu.dot_dimension_numbers<[1], [0], [0], [1], [0, 0, 1, 1], [], []>} : vector<2x64xf32>, vector<64x64xf32>, vector<2x64xf32> -> vector<2x64xf32>
    %30 = arith.addf %29, %14 : vector<2x64xf32>
    %31 = tpu.concatenate %30, %13 in 1 : vector<2x64xf32>, vector<2x64xf32> -> vector<2x128xf32>
    %c0_22 = arith.constant 0 : index
    %c0_23 = arith.constant 0 : index
    %32 = vector.load %arg9[%c0_22, %c0_23] : memref<128x128xf32, #tpu.memory_space<vmem>>, vector<128x128xf32>
    %cst_24 = arith.constant dense<0.000000e+00> : vector<2x128xf32>
    %33 = tpu.matmul %31, %32, %cst_24 {dimension_numbers = #tpu.dot_dimension_numbers<[1], [0], [0], [1], [0, 0, 1, 1], [], []>} : vector<2x128xf32>, vector<128x128xf32>, vector<2x128xf32> -> vector<2x128xf32>
    %34 = arith.addf %33, %9 : vector<2x128xf32>
    %35 = tpu.concatenate %34, %8 in 1 : vector<2x128xf32>, vector<2x128xf32> -> vector<2x256xf32>
    %c0_25 = arith.constant 0 : index
    %c0_26 = arith.constant 0 : index
    %36 = vector.load %arg8[%c0_25, %c0_26] : memref<256x256xf32, #tpu.memory_space<vmem>>, vector<256x256xf32>
    %cst_27 = arith.constant dense<0.000000e+00> : vector<2x256xf32>
    %37 = tpu.matmul %35, %36, %cst_27 {dimension_numbers = #tpu.dot_dimension_numbers<[1], [0], [0], [1], [0, 0, 1, 1], [], []>} : vector<2x256xf32>, vector<256x256xf32>, vector<2x256xf32> -> vector<2x256xf32>
    %c0_28 = arith.constant 0 : index
    %c0_29 = arith.constant 0 : index
    %38 = vector.load %arg11[%c0_28, %c0_29] : memref<2x256xf32, #tpu.memory_space<vmem>>, vector<2x256xf32>
    tpu.vector_store %arg11[%c0_28, %c0_29], %37 {strides = array<i32>} : memref<2x256xf32, #tpu.memory_space<vmem>>, vector<2x256xf32>,
    return
  }
}

module attributes {stable_mosaic.version = 11 : i64} {
  func.func @_attention_kernel(%arg0: i32, %arg1: memref<1x8x32xf32, #tpu.memory_space<vmem>>, %arg2: memref<32x96xbf16, #tpu.memory_space<vmem>>, %arg3: memref<1x96xf32, #tpu.memory_space<vmem>>, %arg4: memref<4x8x32xbf16, #tpu.memory_space<vmem>>, %arg5: memref<1x32xf32, #tpu.memory_space<vmem>>, %arg6: memref<32x32xbf16, #tpu.memory_space<vmem>>, %arg7: memref<1x32xf32, #tpu.memory_space<vmem>>, %arg8: memref<1x8x32xf32, #tpu.memory_space<vmem>>) attributes {dimension_semantics = [#tpu.dimension_semantics<parallel>], iteration_bounds = array<i64: 2>, scalar_prefetch = 0 : i64, scratch_operands = 0 : i64, tpu.core_type = #tpu.core_type<tc>, window_params = [{transform_indices = @transform_0, window_bounds = array<i64: 1, 8, 32>}, {pipeline_mode = #tpu.pipeline_mode<synchronous>, transform_indices = @transform_1, window_bounds = array<i64: 32, 96>}, {pipeline_mode = #tpu.pipeline_mode<synchronous>, transform_indices = @transform_2, window_bounds = array<i64: 1, 96>}, {pipeline_mode = #tpu.pipeline_mode<synchronous>, transform_indices = @transform_3, window_bounds = array<i64: 4, 8, 32>}, {pipeline_mode = #tpu.pipeline_mode<synchronous>, transform_indices = @transform_4, window_bounds = array<i64: 1, 32>}, {pipeline_mode = #tpu.pipeline_mode<synchronous>, transform_indices = @transform_5, window_bounds = array<i64: 32, 32>}, {pipeline_mode = #tpu.pipeline_mode<synchronous>, transform_indices = @transform_6, window_bounds = array<i64: 1, 32>}, {transform_indices = @transform_7, window_bounds = array<i64: 1, 8, 32>}]} {
    %c0 = arith.constant 0 : index
    %c0_0 = arith.constant 0 : index
    %c0_1 = arith.constant 0 : index
    %0 = vector.load %arg1[%c0, %c0_0, %c0_1] : memref<1x8x32xf32, #tpu.memory_space<vmem>>, vector<1x8x32xf32>
    %1 = vector.shape_cast %0 : vector<1x8x32xf32> to vector<8x32xf32>
    %2 = arith.truncf %1 : vector<8x32xf32> to vector<8x32xbf16>
    %c0_2 = arith.constant 0 : index
    %c0_3 = arith.constant 0 : index
    %3 = vector.load %arg2[%c0_2, %c0_3] : memref<32x96xbf16, #tpu.memory_space<vmem>>, vector<32x96xbf16>
    %cst = arith.constant dense<0.000000e+00> : vector<8x96xf32>
    %4 = tpu.matmul %2, %3, %cst {dimension_numbers = #tpu.dot_dimension_numbers<[1], [0], [0], [1], [0, 0, 1, 1], [], []>} : vector<8x32xbf16>, vector<32x96xbf16>, vector<8x96xf32> -> vector<8x96xf32>
    %c0_4 = arith.constant 0 : index
    %c0_5 = arith.constant 0 : index
    %5 = vector.load %arg3[%c0_4, %c0_5] : memref<1x96xf32, #tpu.memory_space<vmem>>, vector<1x96xf32>
    %6 = vector.broadcast %5 : vector<1x96xf32> to vector<8x96xf32>
    %7 = arith.addf %4, %6 : vector<8x96xf32>
    %8 = vector.extract_strided_slice %7 {offsets = [0, 0], sizes = [8, 8], strides = [1, 1]} : vector<8x96xf32> to vector<8x8xf32>
    %9 = vector.extract_strided_slice %7 {offsets = [0, 8], sizes = [8, 8], strides = [1, 1]} : vector<8x96xf32> to vector<8x8xf32>
    %10 = vector.extract_strided_slice %7 {offsets = [0, 16], sizes = [8, 8], strides = [1, 1]} : vector<8x96xf32> to vector<8x8xf32>
    %11 = vector.extract_strided_slice %7 {offsets = [0, 24], sizes = [8, 8], strides = [1, 1]} : vector<8x96xf32> to vector<8x8xf32>
    %12 = vector.shape_cast %8 : vector<8x8xf32> to vector<1x8x8xf32>
    %13 = vector.shape_cast %9 : vector<8x8xf32> to vector<1x8x8xf32>
    %14 = vector.shape_cast %10 : vector<8x8xf32> to vector<1x8x8xf32>
    %15 = vector.shape_cast %11 : vector<8x8xf32> to vector<1x8x8xf32>
    %16 = tpu.concatenate %12, %13, %14, %15 in 0 : vector<1x8x8xf32>, vector<1x8x8xf32>, vector<1x8x8xf32>, vector<1x8x8xf32> -> vector<4x8x8xf32>
    %17 = arith.truncf %16 : vector<4x8x8xf32> to vector<4x8x8xbf16>
    %18 = vector.extract_strided_slice %7 {offsets = [0, 32], sizes = [8, 8], strides = [1, 1]} : vector<8x96xf32> to vector<8x8xf32>
    %19 = vector.extract_strided_slice %7 {offsets = [0, 40], sizes = [8, 8], strides = [1, 1]} : vector<8x96xf32> to vector<8x8xf32>
    %20 = vector.extract_strided_slice %7 {offsets = [0, 48], sizes = [8, 8], strides = [1, 1]} : vector<8x96xf32> to vector<8x8xf32>
    %21 = vector.extract_strided_slice %7 {offsets = [0, 56], sizes = [8, 8], strides = [1, 1]} : vector<8x96xf32> to vector<8x8xf32>
    %22 = vector.shape_cast %18 : vector<8x8xf32> to vector<1x8x8xf32>
    %23 = vector.shape_cast %19 : vector<8x8xf32> to vector<1x8x8xf32>
    %24 = vector.shape_cast %20 : vector<8x8xf32> to vector<1x8x8xf32>
    %25 = vector.shape_cast %21 : vector<8x8xf32> to vector<1x8x8xf32>
    %26 = tpu.concatenate %22, %23, %24, %25 in 0 : vector<1x8x8xf32>, vector<1x8x8xf32>, vector<1x8x8xf32>, vector<1x8x8xf32> -> vector<4x8x8xf32>
    %27 = arith.truncf %26 : vector<4x8x8xf32> to vector<4x8x8xbf16>
    %28 = vector.extract_strided_slice %7 {offsets = [0, 64], sizes = [8, 8], strides = [1, 1]} : vector<8x96xf32> to vector<8x8xf32>
    %29 = vector.extract_strided_slice %7 {offsets = [0, 72], sizes = [8, 8], strides = [1, 1]} : vector<8x96xf32> to vector<8x8xf32>
    %30 = vector.extract_strided_slice %7 {offsets = [0, 80], sizes = [8, 8], strides = [1, 1]} : vector<8x96xf32> to vector<8x8xf32>
    %31 = vector.extract_strided_slice %7 {offsets = [0, 88], sizes = [8, 8], strides = [1, 1]} : vector<8x96xf32> to vector<8x8xf32>
    %32 = vector.shape_cast %28 : vector<8x8xf32> to vector<1x8x8xf32>
    %33 = vector.shape_cast %29 : vector<8x8xf32> to vector<1x8x8xf32>
    %34 = vector.shape_cast %30 : vector<8x8xf32> to vector<1x8x8xf32>
    %35 = vector.shape_cast %31 : vector<8x8xf32> to vector<1x8x8xf32>
    %36 = tpu.concatenate %32, %33, %34, %35 in 0 : vector<1x8x8xf32>, vector<1x8x8xf32>, vector<1x8x8xf32>, vector<1x8x8xf32> -> vector<4x8x8xf32>
    %37 = arith.truncf %36 : vector<4x8x8xf32> to vector<4x8x8xbf16>
    %cst_6 = arith.constant dense<0.000000e+00> : vector<4x8x8xf32>
    %38 = tpu.matmul %17, %27, %cst_6 {dimension_numbers = #tpu.dot_dimension_numbers<[2], [2], [1], [1], [0, 0, 0, 1, 1, 1], [0], [0]>} : vector<4x8x8xbf16>, vector<4x8x8xbf16>, vector<4x8x8xf32> -> vector<4x8x8xf32>
    %cst_7 = arith.constant 0.353553385 : f32
    %39 = vector.broadcast %cst_7 : f32 to vector<4x8x8xf32>
    %40 = arith.mulf %38, %39 : vector<4x8x8xf32>
    %cst_8 = arith.constant dense<0xFF800000> : vector<4x8xf32>
    %41 = vector.multi_reduction <maximumf>, %40, %cst_8 [2] : vector<4x8x8xf32> to vector<4x8xf32>
    %42 = vector.shape_cast %41 : vector<4x8xf32> to vector<4x8x1xf32>
    %43 = vector.broadcast %42 : vector<4x8x1xf32> to vector<4x8x8xf32>
    %44 = arith.subf %40, %43 : vector<4x8x8xf32>
    %45 = math.exp %44 : vector<4x8x8xf32>
    %cst_9 = arith.constant dense<0.000000e+00> : vector<4x8xf32>
    %46 = vector.multi_reduction <add>, %45, %cst_9 [2] : vector<4x8x8xf32> to vector<4x8xf32>
    %47 = vector.shape_cast %46 : vector<4x8xf32> to vector<4x8x1xf32>
    %48 = vector.broadcast %47 : vector<4x8x1xf32> to vector<4x8x8xf32>
    %49 = arith.divf %45, %48 : vector<4x8x8xf32>
    %50 = arith.truncf %49 : vector<4x8x8xf32> to vector<4x8x8xbf16>
    %cst_10 = arith.constant dense<0.000000e+00> : vector<4x8x8xf32>
    %51 = tpu.matmul %50, %37, %cst_10 {dimension_numbers = #tpu.dot_dimension_numbers<[2], [1], [1], [2], [0, 0, 0, 1, 1, 2], [0], [0]>} : vector<4x8x8xbf16>, vector<4x8x8xbf16>, vector<4x8x8xf32> -> vector<4x8x8xf32>
    %52 = arith.truncf %51 : vector<4x8x8xf32> to vector<4x8x8xbf16>
    %c0_11 = arith.constant 0 : index
    %c0_12 = arith.constant 0 : index
    %c0_13 = arith.constant 0 : index
    %53 = vector.load %arg4[%c0_11, %c0_12, %c0_13] : memref<4x8x32xbf16, #tpu.memory_space<vmem>>, vector<4x8x32xbf16>
    %cst_14 = arith.constant dense<0.000000e+00> : vector<4x8x32xf32>
    %54 = tpu.matmul %52, %53, %cst_14 {dimension_numbers = #tpu.dot_dimension_numbers<[2], [1], [1], [2], [0, 0, 0, 1, 1, 2], [0], [0]>} : vector<4x8x8xbf16>, vector<4x8x32xbf16>, vector<4x8x32xf32> -> vector<4x8x32xf32>
    %cst_15 = arith.constant dense<0.000000e+00> : vector<8x32xf32>
    %55 = vector.multi_reduction <add>, %54, %cst_15 [0] : vector<4x8x32xf32> to vector<8x32xf32>
    %c0_16 = arith.constant 0 : index
    %c0_17 = arith.constant 0 : index
    %56 = vector.load %arg5[%c0_16, %c0_17] : memref<1x32xf32, #tpu.memory_space<vmem>>, vector<1x32xf32>
    %57 = vector.broadcast %56 : vector<1x32xf32> to vector<8x32xf32>
    %58 = arith.addf %55, %57 : vector<8x32xf32>
    %59 = arith.truncf %58 : vector<8x32xf32> to vector<8x32xbf16>
    %c0_18 = arith.constant 0 : index
    %c0_19 = arith.constant 0 : index
    %60 = vector.load %arg6[%c0_18, %c0_19] : memref<32x32xbf16, #tpu.memory_space<vmem>>, vector<32x32xbf16>
    %cst_20 = arith.constant dense<0.000000e+00> : vector<8x32xf32>
    %61 = tpu.matmul %59, %60, %cst_20 {dimension_numbers = #tpu.dot_dimension_numbers<[1], [0], [0], [1], [0, 0, 1, 1], [], []>} : vector<8x32xbf16>, vector<32x32xbf16>, vector<8x32xf32> -> vector<8x32xf32>
    %c0_21 = arith.constant 0 : index
    %c0_22 = arith.constant 0 : index
    %62 = vector.load %arg7[%c0_21, %c0_22] : memref<1x32xf32, #tpu.memory_space<vmem>>, vector<1x32xf32>
    %63 = vector.broadcast %62 : vector<1x32xf32> to vector<8x32xf32>
    %64 = arith.addf %61, %63 : vector<8x32xf32>
    %c0_23 = arith.constant 0 : index
    %c0_24 = arith.constant 0 : index
    %c0_25 = arith.constant 0 : index
    %65 = vector.load %arg8[%c0_23, %c0_24, %c0_25] : memref<1x8x32xf32, #tpu.memory_space<vmem>>, vector<1x8x32xf32>
    %66 = vector.shape_cast %65 : vector<1x8x32xf32> to vector<8x32xf32>
    %67 = vector.shape_cast %64 : vector<8x32xf32> to vector<1x8x32xf32>
    tpu.vector_store %arg8[%c0_23, %c0_24, %c0_25], %67 {strides = array<i32>} : memref<1x8x32xf32, #tpu.memory_space<vmem>>, vector<1x8x32xf32>,
    return
  }
  func.func @transform_0(%arg0: i32) -> (i32, i32, i32) {
    %c0_i32 = arith.constant 0 : i32
    %c0_i32_0 = arith.constant 0 : i32
    %c0_i32_1 = arith.constant 0 : i32
    return %arg0, %c0_i32, %c0_i32_0 : i32, i32, i32
  }
  func.func @transform_1(%arg0: i32) -> (i32, i32) {
    %c0_i32 = arith.constant 0 : i32
    %c0_i32_0 = arith.constant 0 : i32
    %c0_i32_1 = arith.constant 0 : i32
    return %c0_i32, %c0_i32_0 : i32, i32
  }
  func.func @transform_2(%arg0: i32) -> (i32, i32) {
    %c0_i32 = arith.constant 0 : i32
    %c0_i32_0 = arith.constant 0 : i32
    %c0_i32_1 = arith.constant 0 : i32
    return %c0_i32, %c0_i32_0 : i32, i32
  }
  func.func @transform_3(%arg0: i32) -> (i32, i32, i32) {
    %c0_i32 = arith.constant 0 : i32
    %c0_i32_0 = arith.constant 0 : i32
    %c0_i32_1 = arith.constant 0 : i32
    %c0_i32_2 = arith.constant 0 : i32
    return %c0_i32, %c0_i32_0, %c0_i32_1 : i32, i32, i32
  }
  func.func @transform_4(%arg0: i32) -> (i32, i32) {
    %c0_i32 = arith.constant 0 : i32
    %c0_i32_0 = arith.constant 0 : i32
    %c0_i32_1 = arith.constant 0 : i32
    return %c0_i32, %c0_i32_0 : i32, i32
  }
  func.func @transform_5(%arg0: i32) -> (i32, i32) {
    %c0_i32 = arith.constant 0 : i32
    %c0_i32_0 = arith.constant 0 : i32
    %c0_i32_1 = arith.constant 0 : i32
    return %c0_i32, %c0_i32_0 : i32, i32
  }
  func.func @transform_6(%arg0: i32) -> (i32, i32) {
    %c0_i32 = arith.constant 0 : i32
    %c0_i32_0 = arith.constant 0 : i32
    %c0_i32_1 = arith.constant 0 : i32
    return %c0_i32, %c0_i32_0 : i32, i32
  }
  func.func @transform_7(%arg0: i32) -> (i32, i32, i32) {
    %c0_i32 = arith.constant 0 : i32
    %c0_i32_0 = arith.constant 0 : i32
    %c0_i32_1 = arith.constant 0 : i32
    return %arg0, %c0_i32, %c0_i32_0 : i32, i32, i32
  }
}

</mosaic_0001>

<bundles_post_ra>
// kernel: _lambda_.2
= control target key start
LH: loop header
LB: loop body
LE: loop exit
PB: predicated region body
PF: predicated region fallthrough
CT: control target
= control target key end

     0   :  { %16 = vsyncpa [#allocation3], 0  ;;  %s2009_s0 = inlined_call_operand.vmem [shape: f32[2,256], index: 0, kind: input, shape index: {}]   ;;  %s2010_s1 = inlined_call_operand.hbm [shape: f32[256,256], index: 1, kind: input, shape index: {}]   ;;  %s2011_s2 = inlined_call_operand.vmem [shape: f32[1,256], index: 2, kind: input, shape index: {}]   ;;  %s2012_s3 = inlined_call_operand.hbm [shape: f32[256,384], index: 3, kind: input, shape index: {}]   ;;  %s2013_s4 = inlined_call_operand.hbm [shape: f32[128,192], index: 4, kind: input, shape index: {}]   ;;  %s2014_s5 = inlined_call_operand.hbm [shape: f32[64,96], index: 5, kind: input, shape index: {}]   ;;  %s2015_s6 = inlined_call_operand.vmem [shape: f32[32,32], index: 6, kind: input, shape index: {}]   ;;  %s2016_s7 = inlined_call_operand.vmem [shape: f32[1,32], index: 7, kind: input, shape index: {}]   ;;  %s2017_s8 = inlined_call_operand.hbm [shape: f32[256,256], index: 8, kind: input, shape index: {}]   ;;  %s2018_s9 = inlined_call_operand.hbm [shape: f32[128,128], index: 9, kind: input, shape index: {}]   ;;  %s2019_s10 = inlined_call_operand.vmem [shape: f32[64,64], index: 10, kind: input, shape index: {}]   ;;  %s2020_s11 = inlined_call_operand.vmem [shape: f32[2,256], index: 11, kind: output, shape index: {}]  }
   0x1   :  { %17 = vsyncpa [#allocation5], 0 }
   0x2   :  { %18 = vsyncpa [#allocation8], 0 }
   0x3   :  { %19 = vsyncpa [#allocation11], 0  ;;  %s1756_s17 = smov [#allocation4]   ;;  %s1616_s21 = scalar_lea.hbm %s2012_s3, 12288 }
   0x4   :  { %s41_s18 = sshll.u32 %s1756_s17, 4  ;;  %p1617_p0 = scmp.ne.s32.totalorder %s2012_s3, %s1616_s21  ;;  %s42_s18 = int_to_ptr.vmem [resolvable:$true] %s41_s18 }
   0x5   :  { %p1620_p1 = scmp.lt.u32.totalorder %s1616_s21, %s2012_s3 }
   0x7   :  { %p1622_p2 = pnand %p1620_p1, %p1617_p0 }
   0x9   :  { %1625 = shalt.err (!%p1622_p2)
}
   0xa   :  { %s1626_s26 = scalar_lea.vmem %s42_s18, 12288  ;;  %p1631_p4 = scmp.lt.s32.totalorder %s42_s18, %s42_s18 }
   0xb   :  { %p1627_p3 = scmp.ne.s32.totalorder %s42_s18, %s1626_s26  ;;  %p1632_p5 = scmp.lt.s32.totalorder %s1626_s26, %s1626_s26 }
   0xd   :  { %p1633_p6 = por %p1632_p5, %p1631_p4 }
   0xf   :  { %p1634_p7 = pnand %p1633_p6, %p1627_p3 }
  0x11   :  { %1637 = shalt.err (!%p1634_p7)
}
  0x12   :  { %s1757_s27 = smov 384   ;;  %s1758_s28 = smov 24  }
  0x13   :  { %47 = dma.hbm_to_vmem [thread:$0]  %s2012_s3, 12288, %s42_s18, [#allocation5], %s1757_s27, %s1757_s27, %s1758_s28  }
  0x14   :  { %s1759_s12 = smov [#allocation7]   ;;  %s1638_s16 = scalar_lea.hbm %s2014_s5, 1024 }
  0x15   :  { %s65_s13 = sshll.u32 %s1759_s12, 4  ;;  %p1639_p8 = scmp.ne.s32.totalorder %s2014_s5, %s1638_s16  ;;  %s66_s13 = int_to_ptr.vmem [resolvable:$true] %s65_s13 }
  0x16   :  { %p1642_p9 = scmp.lt.u32.totalorder %s1638_s16, %s2014_s5 }
  0x18   :  { %p1644_p10 = pnand %p1642_p9, %p1639_p8 }
  0x1a   :  { %1647 = shalt.err (!%p1644_p10)
}
  0x1b   :  { %s1648_s22 = scalar_lea.vmem %s66_s13, 1024  ;;  %p1653_p12 = scmp.lt.s32.totalorder %s66_s13, %s66_s13 }
  0x1c   :  { %p1649_p11 = scmp.ne.s32.totalorder %s66_s13, %s1648_s22  ;;  %p1654_p13 = scmp.lt.s32.totalorder %s1648_s22, %s1648_s22 }
  0x1e   :  { %p1655_p0 = por %p1654_p13, %p1653_p12 }
  0x20   :  { %p1656_p1 = pnand %p1655_p0, %p1649_p11 }
  0x22   :  { %1659 = shalt.err (!%p1656_p1)
}
  0x23   :  { %s1760_s3 = smov 128   ;;  %s1761_s18 = smov 8  }
  0x24   :  { %71 = dma.hbm_to_vmem [thread:$0]  %s2014_s5, 1024, %s66_s13, [#allocation8], %s1760_s3, %s1760_s3, %s1761_s18  }
  0x25   :  { %s1762_s25 = smov [#allocation2]   ;;  %s1660_s29 = scalar_lea.hbm %s2010_s1, 8192 }
  0x26   :  { %s27_s26 = sshll.u32 %s1762_s25, 4  ;;  %p1661_p2 = scmp.ne.s32.totalorder %s2010_s1, %s1660_s29  ;;  %s28_s26 = int_to_ptr.vmem [resolvable:$true] %s27_s26 }
  0x27   :  { %p1664_p3 = scmp.lt.u32.totalorder %s1660_s29, %s2010_s1 }
  0x29   :  { %p1666_p4 = pnand %p1664_p3, %p1661_p2 }
  0x2b   :  { %1669 = shalt.err (!%p1666_p4)
}
  0x2c   :  { %s1670_s16 = scalar_lea.vmem %s28_s26, 8192  ;;  %p1675_p6 = scmp.lt.s32.totalorder %s28_s26, %s28_s26 }
  0x2d   :  { %p1671_p5 = scmp.ne.s32.totalorder %s28_s26, %s1670_s16  ;;  %p1676_p7 = scmp.lt.s32.totalorder %s1670_s16, %s1670_s16 }
  0x2f   :  { %p1677_p8 = por %p1676_p7, %p1675_p6 }
  0x31   :  { %p1678_p9 = pnand %p1677_p8, %p1671_p5 }
  0x33   :  { %1681 = shalt.err (!%p1678_p9)
}
  0x34   :  { %s1763_s5 = smov 256   ;;  %s1764_s13 = smov 16  }
  0x35   :  { %33 = dma.hbm_to_vmem [thread:$0]  %s2010_s1, 8192, %s28_s26, [#allocation3], %s1763_s5, %s1763_s5, %s1764_s13  }
  0x36   :  { %s1765_s20 = smov [#allocation6]   ;;  %s1766_s22 = smov [#allocation9]  }
  0x37   :  { %s53_s21 = sshll.u32 %s1765_s20, 4  ;;  %s81_s23 = sshll.u32 %s1766_s22, 4  ;;  %s54_s21 = int_to_ptr.vmem [resolvable:$true] %s53_s21  ;;  %s82_s23 = int_to_ptr.vmem [resolvable:$true] %s81_s23 }
  0x38   :  { %s1682_s27 = scalar_lea.hbm %s2013_s4, 4096 }
  0x39   :  { %p1683_p10 = scmp.ne.s32.totalorder %s2013_s4, %s1682_s27  ;;  %p1686_p11 = scmp.lt.u32.totalorder %s1682_s27, %s2013_s4 }
  0x3b   :  { %p1688_p12 = pnand %p1686_p11, %p1683_p10 }
  0x3d   :  { %1691 = shalt.err (!%p1688_p12)
}
  0x3e   :  { %s1692_s1 = scalar_lea.vmem %s54_s21, 4096  ;;  %p1697_p0 = scmp.lt.s32.totalorder %s54_s21, %s54_s21 }
  0x3f   :  { %p1693_p13 = scmp.ne.s32.totalorder %s54_s21, %s1692_s1  ;;  %p1698_p1 = scmp.lt.s32.totalorder %s1692_s1, %s1692_s1 }
  0x41   :  { %p1699_p2 = por %p1698_p1, %p1697_p0 }
  0x43   :  { %p1700_p3 = pnand %p1699_p2, %p1693_p13 }
  0x45   :  { %1703 = shalt.err (!%p1700_p3)
}
  0x46   :  { %59 = dma.hbm_to_vmem [thread:$0]  %s2013_s4, 4096, %s54_s21, [#allocation5], %s1763_s5, %s1763_s5, %s1764_s13  }
  0x47   :  { %s1704_s17 = scalar_lea.hbm %s2017_s8, 8192 }
  0x48   :  { %p1705_p4 = scmp.ne.s32.totalorder %s2017_s8, %s1704_s17  ;;  %p1708_p5 = scmp.lt.u32.totalorder %s1704_s17, %s2017_s8 }
  0x4a   :  { %p1710_p6 = pnand %p1708_p5, %p1705_p4 }
  0x4c   :  { %1713 = shalt.err (!%p1710_p6)
}
  0x4d   :  { %s1714_s25 = scalar_lea.vmem %s82_s23, 8192  ;;  %p1719_p8 = scmp.lt.s32.totalorder %s82_s23, %s82_s23 }
  0x4e   :  { %p1715_p7 = scmp.ne.s32.totalorder %s82_s23, %s1714_s25  ;;  %p1720_p9 = scmp.lt.s32.totalorder %s1714_s25, %s1714_s25 }
  0x50   :  { %p1721_p10 = por %p1720_p9, %p1719_p8 }
  0x52   :  { %p1722_p11 = pnand %p1721_p10, %p1715_p7 }
  0x54   :  { %1725 = shalt.err (!%p1722_p11)
}
  0x55   :  { %87 = dma.hbm_to_vmem [thread:$0]  %s2017_s8, 8192, %s82_s23, [#allocation8], %s1763_s5, %s1763_s5, %s1764_s13  }
  0x56   :  { %s1767_s27 = smov [#allocation10]   ;;  %s1726_s12 = scalar_lea.hbm %s2018_s9, 2048 }
  0x57   :  { %s93_s28 = sshll.u32 %s1767_s27, 4  ;;  %p1727_p12 = scmp.ne.s32.totalorder %s2018_s9, %s1726_s12  ;;  %s94_s28 = int_to_ptr.vmem [resolvable:$true] %s93_s28 }
  0x58   :  { %p1730_p13 = scmp.lt.u32.totalorder %s1726_s12, %s2018_s9 }
  0x5a   :  { %p1732_p0 = pnand %p1730_p13, %p1727_p12 }
  0x5c   :  { %1735 = shalt.err (!%p1732_p0)
}
  0x5d   :  { %s1736_s16 = scalar_lea.vmem %s94_s28, 2048  ;;  %p1741_p2 = scmp.lt.s32.totalorder %s94_s28, %s94_s28 }
  0x5e   :  { %p1737_p1 = scmp.ne.s32.totalorder %s94_s28, %s1736_s16  ;;  %p1742_p3 = scmp.lt.s32.totalorder %s1736_s16, %s1736_s16 }
  0x60   :  { %p1743_p4 = por %p1742_p3, %p1741_p2 }
  0x62   :  { %p1744_p5 = pnand %p1743_p4, %p1737_p1 }
  0x64   :  { %1747 = shalt.err (!%p1744_p5)
}
  0x65   :  { %99 = dma.hbm_to_vmem [thread:$0]  %s2018_s9, 2048, %s94_s28, [#allocation11], %s1760_s3, %s1760_s3, %s1761_s18  }
  0x66   :  { %1748 = dma.done.wait [#allocation3], 8192  }
  0x67   :  { %1749 = vsyncadd [#allocation3], 4294959104 }
  0x68   :  { %1750 = dma.done.wait [#allocation5], 16384  }
  0x69   :  { %1751 = vsyncadd [#allocation5], 4294950912 }
  0x6a   :  { %1752 = dma.done.wait [#allocation8], 9216  }
  0x6b   :  { %1753 = vsyncadd [#allocation8], 4294958080 }
  0x6c   :  { %1754 = dma.done.wait [#allocation11], 2048  }
  0x6d   :  { %1755 = vsyncadd [#allocation11], 4294965248  ;;  %v122_v0 = vld [vmem:[#allocation2 + $0x8] sm:$0xff]  ;;  %v124_v1 = vld [vmem:[#allocation2 + $0x18] sm:$0xff]  ;;  %vm1770_vm0 = vmmov 0   ;;  %vm627_vm1 = vcmask 523264  }
  0x6e   :  { %v121_v2 = vld [vmem:[#allocation2] sm:$0xff]  ;;  %v1288_v3 = vpack.c.bf16 %v124_v1, %v122_v0  ;;  %v123_v4 = vld [vmem:[#allocation2 + $0x10] sm:$0xff]  ;;  %v126_v5 = vld [vmem:[#allocation2 + $0x28] sm:$0xff]  ;;  %s1771_s15 = smov 32   ;;  %s1772_s16 = smov 64   ;;  %vm715_vm2 = vcmask 261120  }
  0x6f   :  { %v128_v6 = vld [vmem:[#allocation2 + $0x38] sm:$0xff]  ;;  %v1290_v7 = vpack.c.bf16 %v123_v4, %v121_v2  ;;  %v125_v9 = vld [vmem:[#allocation2 + $0x20] sm:$0xff]  ;;  %v127_v10 = vld [vmem:[#allocation2 + $0x30] sm:$0xff]  ;;  %s1773_s8 = smov 96  }
  0x70   :  { %v1292_v8 = vpack.c.bf16 %v128_v6, %v126_v5  ;;  %v130_v11 = vld [vmem:[#allocation2 + $0x48] sm:$0xff]  ;;  %1289 = vmatprep.subr.bf16.mxu0 %v1288_v3  ;;  %v132_v12 = vld [vmem:[#allocation2 + $0x58] sm:$0xff]  ;;  %v1294_v13 = vpack.c.bf16 %v127_v10, %v125_v9  ;;  %v129_v15 = vld [vmem:[#allocation2 + $0x40] sm:$0xff] }
  0x71   :  { %1291 = vmatpush1.bf16.msra.mxu0 %v1290_v7  ;;  %v1296_v14 = vpack.c.bf16 %v132_v12, %v130_v11  ;;  %v131_v16 = vld [vmem:[#allocation2 + $0x50] sm:$0xff]  ;;  %v134_v17 = vld [vmem:[#allocation2 + $0x68] sm:$0xff]  ;;  %v136_v18 = vld [vmem:[#allocation2 + $0x78] sm:$0xff] }
  0x72   :  { %1293 = vmatprep.subr.bf16.mxu0 %v1292_v8  ;;  %v1298_v19 = vpack.c.bf16 %v131_v16, %v129_v15  ;;  %v1300_v20 = vpack.c.bf16 %v136_v18, %v134_v17  ;;  %v133_v21 = vld [vmem:[#allocation2 + $0x60] sm:$0xff]  ;;  %v135_v22 = vld [vmem:[#allocation2 + $0x70] sm:$0xff]  ;;  %v138_v23 = vld [vmem:[#allocation2 + $0x88] sm:$0xff] }
  0x73   :  { %v140_v24 = vld [vmem:[#allocation2 + $0x98] sm:$0xff]  ;;  %v1302_v25 = vpack.c.bf16 %v135_v22, %v133_v21  ;;  %v137_v27 = vld [vmem:[#allocation2 + $0x80] sm:$0xff]  ;;  %v139_v28 = vld [vmem:[#allocation2 + $0x90] sm:$0xff] }
  0x74   :  { %v1304_v26 = vpack.c.bf16 %v140_v24, %v138_v23  ;;  %v142_v29 = vld [vmem:[#allocation2 + $0xa8] sm:$0xff]  ;;  %v144_v30 = vld [vmem:[#allocation2 + $0xb8] sm:$0xff]  ;;  %v1306_v31 = vpack.c.bf16 %v139_v28, %v137_v27  ;;  %v141_v33 = vld [vmem:[#allocation2 + $0xa0] sm:$0xff] }
  0x75   :  { %1295 = vmatpush1.bf16.msra.mxu0 %v1294_v13  ;;  %v1308_v32 = vpack.c.bf16 %v144_v30, %v142_v29  ;;  %v143_v34 = vld [vmem:[#allocation2 + $0xb0] sm:$0xff]  ;;  %v146_v35 = vld [vmem:[#allocation2 + $0xc8] sm:$0xff]  ;;  %v148_v36 = vld [vmem:[#allocation2 + $0xd8] sm:$0xff] }
  0x76   :  { %1297 = vmatprep.subr.bf16.mxu0 %v1296_v14  ;;  %v1310_v37 = vpack.c.bf16 %v143_v34, %v141_v33  ;;  %v145_v38 = vld [vmem:[#allocation2 + $0xc0] sm:$0xff]  ;;  %v147_v39 = vld [vmem:[#allocation2 + $0xd0] sm:$0xff]  ;;  %v150_v40 = vld [vmem:[#allocation2 + $0xe8] sm:$0xff]  ;;  %v1312_v41 = vpack.c.bf16 %v148_v36, %v146_v35 }
  0x77   :  { %v152_v42 = vld [vmem:[#allocation2 + $0xf8] sm:$0xff]  ;;  %v1924_v43 = vld.sshfl [vmem:[%s2009_s0] sm:$0x33 pattern:$0x76325410]  ;;  %v280_v44 = vld [vmem:[#allocation4 + $0x8] sm:$0xff]  ;;  %v1314_v54 = vpack.c.bf16 %v147_v39, %v145_v38 }
  0x78   :  { %v205_v45 = vcombine.high %v1924_v43, %v1924_v43  ;;  %v283_v46 = vld [vmem:[#allocation4 + $0x20] sm:$0xff]  ;;  %v282_v48 = vld [vmem:[#allocation4 + $0x18] sm:$0xff]  ;;  %v289_v52 = vld [vmem:[#allocation4 + $0x50] sm:$0xff]  ;;  %v1316_v59 = vpack.c.bf16 %v152_v42, %v150_v40 }
  0x79   :  { %1299 = vmatpush1.bf16.msra.mxu0 %v1298_v19  ;;  %v279_v47 = vld [vmem:[#allocation4] sm:$0xff]  ;;  %v1352_v49 = vpack.c.bf16 %v283_v46, %v280_v44  ;;  %v286_v51 = vld [vmem:[#allocation4 + $0x38] sm:$0xff]  ;;  %v285_v53 = vld [vmem:[#allocation4 + $0x30] sm:$0xff] }
  0x7a   :  { %1301 = vmatprep.subr.bf16.mxu0 %v1300_v20  ;;  %v1354_v50 = vpack.c.bf16 %v282_v48, %v279_v47  ;;  %272 = vmatprep.mubr.f32.mxu0 %v205_v45  ;;  %v1356_v55 = vpack.c.bf16 %v289_v52, %v286_v51  ;;  %v288_v56 = vld [vmem:[#allocation4 + $0x48] sm:$0xff]  ;;  %v295_v58 = vld [vmem:[#allocation4 + $0x80] sm:$0xff]  ;;  %v151_v61 = vld [vmem:[#allocation2 + $0xf0] sm:$0xff] }
  0x7b   :  { %v292_v57 = vld [vmem:[#allocation4 + $0x68] sm:$0xff]  ;;  %v149_v60 = vld [vmem:[#allocation2 + $0xe0] sm:$0xff]  ;;  %1353 = vmatprep.subr.bf16.mxu1 %v1352_v49  ;;  %v156_v63 = vld [vmem:[#allocation2 + $0x118] sm:$0xff]  ;;  %v1358_v0 = vpack.c.bf16 %v288_v56, %v285_v53 }
  0x7c   :  { %v154_v62 = vld [vmem:[#allocation2 + $0x108] sm:$0xff]  ;;  %1355 = vmatpush1.bf16.msra.mxu1 %v1354_v50  ;;  %v1360_v1 = vpack.c.bf16 %v295_v58, %v292_v57  ;;  %v291_v2 = vld [vmem:[#allocation4 + $0x60] sm:$0xff]  ;;  %v294_v3 = vld [vmem:[#allocation4 + $0x78] sm:$0xff]  ;;  %v1318_v4 = vpack.c.bf16 %v151_v61, %v149_v60 }
  0x7d   :  { %1303 = vmatpush1.bf16.msra.mxu0 %v1302_v25  ;;  %1357 = vmatprep.subr.bf16.mxu1 %v1356_v55  ;;  %v298_v5 = vld [vmem:[#allocation4 + $0x98] sm:$0xff]  ;;  %v301_v6 = vld [vmem:[#allocation4 + $0xb0] sm:$0xff]  ;;  %v1320_v7 = vpack.c.bf16 %v156_v63, %v154_v62  ;;  %v153_v8 = vld [vmem:[#allocation2 + $0x100] sm:$0xff]  ;;  %v1362_v12 = vpack.c.bf16 %v294_v3, %v291_v2 }
  0x7e   :  { %1305 = vmatprep.subr.bf16.mxu0 %v1304_v26  ;;  %v155_v9 = vld [vmem:[#allocation2 + $0x110] sm:$0xff]  ;;  %v158_v10 = vld [vmem:[#allocation2 + $0x128] sm:$0xff]  ;;  %v160_v11 = vld [vmem:[#allocation2 + $0x138] sm:$0xff]  ;;  %v1364_v13 = vpack.c.bf16 %v301_v6, %v298_v5 }
  0x7f   :  { %v297_v14 = vld [vmem:[#allocation4 + $0x90] sm:$0xff]  ;;  %v300_v15 = vld [vmem:[#allocation4 + $0xa8] sm:$0xff]  ;;  %v1322_v16 = vpack.c.bf16 %v155_v9, %v153_v8  ;;  %v307_v18 = vld [vmem:[#allocation4 + $0xe0] sm:$0xff]  ;;  %v1324_v19 = vpack.c.bf16 %v160_v11, %v158_v10 }
  0x80   :  { %1359 = vmatpush1.bf16.msra.mxu1 %v1358_v0  ;;  %v304_v17 = vld [vmem:[#allocation4 + $0xc8] sm:$0xff]  ;;  %v157_v20 = vld [vmem:[#allocation2 + $0x120] sm:$0xff]  ;;  %v159_v21 = vld [vmem:[#allocation2 + $0x130] sm:$0xff]  ;;  %v1366_v24 = vpack.c.bf16 %v300_v15, %v297_v14 }
  0x81   :  { %1307 = vmatpush1.bf16.msra.mxu0 %v1306_v31  ;;  %1361 = vmatprep.subr.bf16.mxu1 %v1360_v1  ;;  %v162_v22 = vld [vmem:[#allocation2 + $0x148] sm:$0xff]  ;;  %v164_v23 = vld [vmem:[#allocation2 + $0x158] sm:$0xff]  ;;  %v1368_v25 = vpack.c.bf16 %v307_v18, %v304_v17  ;;  %v303_v26 = vld [vmem:[#allocation4 + $0xc0] sm:$0xff]  ;;  %v1326_v28 = vpack.c.bf16 %v159_v21, %v157_v20 }
  0x82   :  { %1309 = vmatprep.subr.bf16.mxu0 %v1308_v32  ;;  %v306_v27 = vld [vmem:[#allocation4 + $0xd8] sm:$0xff]  ;;  %v313_v30 = vld [vmem:[#allocation4 + $0x110] sm:$0xff]  ;;  %v1328_v31 = vpack.c.bf16 %v164_v23, %v162_v22  ;;  %v161_v32 = vld [vmem:[#allocation2 + $0x140] sm:$0xff] }
  0x83   :  { %v310_v29 = vld [vmem:[#allocation4 + $0xf8] sm:$0xff]  ;;  %v163_v33 = vld [vmem:[#allocation2 + $0x150] sm:$0xff]  ;;  %v166_v34 = vld [vmem:[#allocation2 + $0x168] sm:$0xff]  ;;  %v1370_v36 = vpack.c.bf16 %v306_v27, %v303_v26 }
  0x84   :  { %1363 = vmatpush1.bf16.msra.mxu1 %v1362_v12  ;;  %v168_v35 = vld [vmem:[#allocation2 + $0x178] sm:$0xff]  ;;  %v309_v38 = vld [vmem:[#allocation4 + $0xf0] sm:$0xff]  ;;  %v312_v39 = vld [vmem:[#allocation4 + $0x108] sm:$0xff]  ;;  %v1330_v40 = vpack.c.bf16 %v163_v33, %v161_v32 }
  0x85   :  { %1311 = vmatpush1.bf16.msra.mxu0 %v1310_v37  ;;  %1365 = vmatprep.subr.bf16.mxu1 %v1364_v13  ;;  %v1372_v37 = vpack.c.bf16 %v313_v30, %v310_v29  ;;  %v319_v42 = vld [vmem:[#allocation4 + $0x140] sm:$0xff]  ;;  %v1332_v44 = vpack.c.bf16 %v168_v35, %v166_v34  ;;  %v167_v46 = vld [vmem:[#allocation2 + $0x170] sm:$0xff]  ;;  %v170_v47 = vld [vmem:[#allocation2 + $0x188] sm:$0xff]  ;;  %v1374_v49 = vpack.c.bf16 %v312_v39, %v309_v38 }
  0x86   :  { %1313 = vmatprep.subr.bf16.mxu0 %v1312_v41  ;;  %v316_v41 = vld [vmem:[#allocation4 + $0x128] sm:$0xff]  ;;  %v165_v45 = vld [vmem:[#allocation2 + $0x160] sm:$0xff]  ;;  %v172_v48 = vld [vmem:[#allocation2 + $0x198] sm:$0xff] }
  0x87   :  { %v1376_v50 = vpack.c.bf16 %v319_v42, %v316_v41  ;;  %v315_v51 = vld [vmem:[#allocation4 + $0x120] sm:$0xff]  ;;  %v318_v52 = vld [vmem:[#allocation4 + $0x138] sm:$0xff]  ;;  %v1334_v53 = vpack.c.bf16 %v167_v46, %v165_v45  ;;  %v325_v55 = vld [vmem:[#allocation4 + $0x170] sm:$0xff]  ;;  %v1336_v56 = vpack.c.bf16 %v172_v48, %v170_v47 }
  0x88   :  { %1367 = vmatpush1.bf16.msra.mxu1 %v1366_v24  ;;  %v169_v57 = vld [vmem:[#allocation2 + $0x180] sm:$0xff]  ;;  %v171_v58 = vld [vmem:[#allocation2 + $0x190] sm:$0xff]  ;;  %v176_v60 = vld [vmem:[#allocation2 + $0x1b8] sm:$0xff]  ;;  %v1378_v61 = vpack.c.bf16 %v318_v52, %v315_v51 }
  0x89   :  { %1315 = vmatpush1.bf16.msra.mxu0 %v1314_v54  ;;  %1369 = vmatprep.subr.bf16.mxu1 %v1368_v25  ;;  %v322_v54 = vld [vmem:[#allocation4 + $0x158] sm:$0xff]  ;;  %v321_v63 = vld [vmem:[#allocation4 + $0x150] sm:$0xff]  ;;  %v324_v0 = vld [vmem:[#allocation4 + $0x168] sm:$0xff]  ;;  %v1338_v1 = vpack.c.bf16 %v171_v58, %v169_v57 }
  0x8a   :  { %1317 = vmatprep.subr.bf16.mxu0 %v1316_v59  ;;  %v174_v59 = vld [vmem:[#allocation2 + $0x1a8] sm:$0xff]  ;;  %v1380_v62 = vpack.c.bf16 %v325_v55, %v322_v54  ;;  %v331_v3 = vld [vmem:[#allocation4 + $0x1a0] sm:$0xff]  ;;  %v175_v6 = vld [vmem:[#allocation2 + $0x1b0] sm:$0xff]  ;;  %v1382_v9 = vpack.c.bf16 %v324_v0, %v321_v63 }
  0x8b   :  { %v328_v2 = vld [vmem:[#allocation4 + $0x188] sm:$0xff]  ;;  %v173_v5 = vld [vmem:[#allocation2 + $0x1a0] sm:$0xff]  ;;  %v180_v8 = vld [vmem:[#allocation2 + $0x1d8] sm:$0xff] }
  0x8c   :  { %1371 = vmatpush1.bf16.msra.mxu1 %v1370_v36  ;;  %v1384_v10 = vpack.c.bf16 %v331_v3, %v328_v2  ;;  %v327_v11 = vld [vmem:[#allocation4 + $0x180] sm:$0xff]  ;;  %v330_v12 = vld [vmem:[#allocation4 + $0x198] sm:$0xff]  ;;  %v1342_v13 = vpack.c.bf16 %v175_v6, %v173_v5  ;;  %v337_v15 = vld [vmem:[#allocation4 + $0x1d0] sm:$0xff] }
  0x8d   :  { %1319 = vmatpush1.bf16.msra.mxu0 %v1318_v4  ;;  %1373 = vmatprep.subr.bf16.mxu1 %v1372_v37  ;;  %v1340_v4 = vpack.c.bf16 %v176_v60, %v174_v59  ;;  %v334_v14 = vld [vmem:[#allocation4 + $0x1b8] sm:$0xff]  ;;  %v177_v17 = vld [vmem:[#allocation2 + $0x1c0] sm:$0xff]  ;;  %v179_v18 = vld [vmem:[#allocation2 + $0x1d0] sm:$0xff]  ;;  %v1386_v21 = vpack.c.bf16 %v330_v12, %v327_v11 }
  0x8e   :  { %1321 = vmatprep.subr.bf16.mxu0 %v1320_v7  ;;  %v178_v7 = vld [vmem:[#allocation2 + $0x1c8] sm:$0xff]  ;;  %v184_v20 = vld [vmem:[#allocation2 + $0x1f8] sm:$0xff]  ;;  %v1388_v22 = vpack.c.bf16 %v337_v15, %v334_v14  ;;  %v333_v23 = vld [vmem:[#allocation4 + $0x1b0] sm:$0xff]  ;;  %v1346_v25 = vpack.c.bf16 %v179_v18, %v177_v17 }
  0x8f   :  { %v336_v24 = vld [vmem:[#allocation4 + $0x1c8] sm:$0xff]  ;;  %v343_v27 = vld [vmem:[#allocation4 + $0x200] sm:$0xff]  ;;  %v183_v30 = vld [vmem:[#allocation2 + $0x1f0] sm:$0xff] }
  0x90   :  { %1375 = vmatpush1.bf16.msra.mxu1 %v1374_v49  ;;  %v340_v26 = vld [vmem:[#allocation4 + $0x1e8] sm:$0xff]  ;;  %v181_v29 = vld [vmem:[#allocation2 + $0x1e0] sm:$0xff]  ;;  %v1390_v33 = vpack.c.bf16 %v336_v24, %v333_v23  ;;  %v342_v36 = vld [vmem:[#allocation4 + $0x1f8] sm:$0xff] }
  0x91   :  { %1323 = vmatpush1.bf16.msra.mxu0 %v1322_v16  ;;  %1377 = vmatprep.subr.bf16.mxu1 %v1376_v50  ;;  %v1344_v16 = vpack.c.bf16 %v180_v8, %v178_v7  ;;  %v332_v32 = vld [vmem:[#allocation4 + $0x1a8] sm:$0xff]  ;;  %v1392_v34 = vpack.c.bf16 %v343_v27, %v340_v26  ;;  %v339_v35 = vld [vmem:[#allocation4 + $0x1e0] sm:$0xff]  ;;  %v1350_v37 = vpack.c.bf16 %v183_v30, %v181_v29  ;;  %v346_v38 = vld [vmem:[#allocation4 + $0x218] sm:$0xff] }
  0x92   :  { %1325 = vmatprep.subr.bf16.mxu0 %v1324_v19  ;;  %v182_v19 = vld [vmem:[#allocation2 + $0x1e8] sm:$0xff]  ;;  %v349_v39 = vld [vmem:[#allocation4 + $0x230] sm:$0xff]  ;;  %v338_v45 = vld [vmem:[#allocation4 + $0x1d8] sm:$0xff]  ;;  %v1394_v46 = vpack.c.bf16 %v342_v36, %v339_v35 }
  0x93   :  { %v281_v41 = vld [vmem:[#allocation4 + $0x10] sm:$0xff]  ;;  %v284_v42 = vld [vmem:[#allocation4 + $0x28] sm:$0xff]  ;;  %v1396_v47 = vpack.c.bf16 %v349_v39, %v346_v38  ;;  %v355_v52 = vld [vmem:[#allocation4 + $0x260] sm:$0xff] }
  0x94   :  { %1379 = vmatpush1.bf16.msra.mxu1 %v1378_v61  ;;  %v345_v48 = vld [vmem:[#allocation4 + $0x210] sm:$0xff]  ;;  %v348_v49 = vld [vmem:[#allocation4 + $0x228] sm:$0xff]  ;;  %v1418_v50 = vpack.c.bf16 %v284_v42, %v281_v41  ;;  %v287_v54 = vld [vmem:[#allocation4 + $0x40] sm:$0xff] }
  0x95   :  { %1327 = vmatpush1.bf16.msra.mxu0 %v1326_v28  ;;  %1381 = vmatprep.subr.bf16.mxu1 %v1380_v62  ;;  %v1348_v28 = vpack.c.bf16 %v184_v20, %v182_v19  ;;  %v352_v51 = vld [vmem:[#allocation4 + $0x248] sm:$0xff]  ;;  %v290_v55 = vld [vmem:[#allocation4 + $0x58] sm:$0xff]  ;;  %v1398_v58 = vpack.c.bf16 %v348_v49, %v345_v48  ;;  %v351_v60 = vld [vmem:[#allocation4 + $0x240] sm:$0xff] }
  0x96   :  { %1329 = vmatprep.subr.bf16.mxu0 %v1328_v31  ;;  %v329_v31 = vld [vmem:[#allocation4 + $0x190] sm:$0xff]  ;;  %v344_v57 = vld [vmem:[#allocation4 + $0x208] sm:$0xff]  ;;  %v1400_v59 = vpack.c.bf16 %v355_v52, %v352_v51  ;;  %v354_v61 = vld [vmem:[#allocation4 + $0x258] sm:$0xff]  ;;  %v1422_v62 = vpack.c.bf16 %v290_v55, %v287_v54  ;;  %v187_v55 = vlaneseq }
  0x97   :  { %v358_v63 = vld [vmem:[#allocation4 + $0x278] sm:$0xff]  ;;  %v361_v0 = vld [vmem:[#allocation4 + $0x290] sm:$0xff]  ;;  %v296_v3 = vld [vmem:[#allocation4 + $0x88] sm:$0xff]  ;;  %v1402_v6 = vpack.c.bf16 %v354_v61, %v351_v60 }
  0x98   :  { %1383 = vmatpush1.bf16.msra.mxu1 %v1382_v9  ;;  %v293_v2 = vld [vmem:[#allocation4 + $0x70] sm:$0xff]  ;;  %v350_v5 = vld [vmem:[#allocation4 + $0x238] sm:$0xff]  ;;  %v1404_v7 = vpack.c.bf16 %v361_v0, %v358_v63  ;;  %v367_v11 = vld [vmem:[#allocation4 + $0x2c0] sm:$0xff] }
  0x99   :  { %1331 = vmatpush1.bf16.msra.mxu0 %v1330_v40  ;;  %1385 = vmatprep.subr.bf16.mxu1 %v1384_v10  ;;  %v1416_v40 = vpack.c.bf16 %v332_v32, %v329_v31  ;;  %v357_v8 = vld [vmem:[#allocation4 + $0x270] sm:$0xff]  ;;  %v1426_v9 = vpack.c.bf16 %v296_v3, %v293_v2  ;;  %v364_v10 = vld [vmem:[#allocation4 + $0x2a8] sm:$0xff]  ;;  %v302_v14 = vld [vmem:[#allocation4 + $0xb8] sm:$0xff] }
  0x9a   :  { %1333 = vmatprep.subr.bf16.mxu0 %v1332_v44  ;;  %v335_v44 = vld [vmem:[#allocation4 + $0x1c0] sm:$0xff]  ;;  %v353_v15 = vld [vmem:[#allocation4 + $0x250] sm:$0xff]  ;;  %v1408_v18 = vpack.c.bf16 %v367_v11, %v364_v10  ;;  %v366_v20 = vld [vmem:[#allocation4 + $0x2b8] sm:$0xff] }
  0x9b   :  { %v363_v19 = vld [vmem:[#allocation4 + $0x2a0] sm:$0xff]  ;;  %v305_v23 = vld [vmem:[#allocation4 + $0xd0] sm:$0xff]  ;;  %v308_v24 = vld [vmem:[#allocation4 + $0xe8] sm:$0xff] }
  0x9c   :  { %1387 = vmatpush1.bf16.msra.mxu1 %v1386_v21  ;;  %v362_v26 = vld [vmem:[#allocation4 + $0x298] sm:$0xff]  ;;  %v1410_v27 = vpack.c.bf16 %v366_v20, %v363_v19  ;;  %v311_v30 = vld [vmem:[#allocation4 + $0x100] sm:$0xff]  ;;  %v365_v32 = vld [vmem:[#allocation4 + $0x2b0] sm:$0xff] }
  0x9d   :  { %1335 = vmatpush1.bf16.msra.mxu0 %v1334_v53  ;;  %1389 = vmatprep.subr.bf16.mxu1 %v1388_v22  ;;  %v1420_v53 = vpack.c.bf16 %v338_v45, %v335_v44  ;;  %v314_v31 = vld [vmem:[#allocation4 + $0x118] sm:$0xff]  ;;  %v317_v36 = vld [vmem:[#allocation4 + $0x130] sm:$0xff]  ;;  %v371_v41 = vld [vmem:[#allocation4 + $0x2e0] sm:$0xff] }
  0x9e   :  { %1337 = vmatprep.subr.bf16.mxu0 %v1336_v56  ;;  %v341_v56 = vld [vmem:[#allocation4 + $0x1f0] sm:$0xff]  ;;  %v370_v39 = vld [vmem:[#allocation4 + $0x2d8] sm:$0xff]  ;;  %v323_v49 = vld [vmem:[#allocation4 + $0x160] sm:$0xff] }
  0x9f   :  { %v374_v44 = vld [vmem:[#allocation4 + $0x2f8] sm:$0xff]  ;;  %v369_v45 = vld [vmem:[#allocation4 + $0x2d0] sm:$0xff]  ;;  %v517_v52 = vld [vmem:[#allocation6 + $0x8] sm:$0xff] }
  0xa0   :  { %1391 = vmatpush1.bf16.msra.mxu1 %v1390_v33  ;;  %v368_v33 = vld [vmem:[#allocation4 + $0x2c8] sm:$0xff]  ;;  %v518_v63 = vld [vmem:[#allocation6 + $0x10] sm:$0xff]  ;;  %v523_v2 = vld [vmem:[#allocation6 + $0x38] sm:$0xff] }
  0xa1   :  { %1339 = vmatpush1.bf16.msra.mxu0 %v1338_v1  ;;  %1393 = vmatprep.subr.bf16.mxu1 %v1392_v34  ;;  %v1424_v1 = vpack.c.bf16 %v344_v57, %v341_v56  ;;  %v1438_v34 = vpack.c.bf16 %v314_v31, %v311_v30  ;;  %v1440_v35 = vpack.c.bf16 %v368_v33, %v365_v32  ;;  %v188_v56 = vshrl.u32 %v187_v55, 7  ;;  %v527_v10 = vld [vmem:[#allocation6 + $0x58] sm:$0xff]  ;;  %v528_v19 = vld [vmem:[#allocation6 + $0x60] sm:$0xff]  ;;  %v530_v20 = vld [vmem:[#allocation6 + $0x70] sm:$0xff] }
  0xa2   :  { %1341 = vmatprep.subr.bf16.mxu0 %v1340_v4  ;;  %v347_v4 = vld [vmem:[#allocation4 + $0x220] sm:$0xff]  ;;  %v538_v32 = vld [vmem:[#allocation6 + $0xb0] sm:$0xff]  ;;  %v541_v33 = vld [vmem:[#allocation6 + $0xc8] sm:$0xff] }
  0xa3   :  { %v1428_v12 = vpack.c.bf16 %v350_v5, %v347_v4  ;;  %v193_v57 = vsub.s32 1, %v188_v56  ;;  %v536_v31 = vld [vmem:[#allocation6 + $0xa0] sm:$0xff] }
  0xa4   :  { %1395 = vmatpush1.bf16.msra.mxu1 %v1394_v46  ;;  %v372_v46 = vld [vmem:[#allocation4 + $0x2e8] sm:$0xff]  ;;  %v623_v55 = vld [vmem:[#allocation7 + $0x20] sm:$0xff] }
  0xa5   :  { %1343 = vmatpush1.bf16.msra.mxu0 %v1342_v13  ;;  %1397 = vmatprep.subr.bf16.mxu1 %v1396_v47  ;;  %v299_v13 = vld [vmem:[#allocation4 + $0xa0] sm:$0xff]  ;;  %v1444_v47 = vpack.c.bf16 %v374_v44, %v371_v41  ;;  %v1414_v48 = vpack.c.bf16 %v372_v46, %v369_v45  ;;  %v547_v41 = vld [vmem:[#allocation6 + $0xf8] sm:$0xff]  ;;  %v546_v45 = vld [vmem:[#allocation6 + $0xf0] sm:$0xff] }
  0xa6   :  { %1345 = vmatprep.subr.bf16.mxu0 %v1344_v16  ;;  %v356_v16 = vld [vmem:[#allocation4 + $0x268] sm:$0xff]  ;;  %v1430_v21 = vpack.c.bf16 %v302_v14, %v299_v13  ;;  %v524_v13 = vld [vmem:[#allocation6 + $0x40] sm:$0xff]  ;;  %v526_v14 = vld [vmem:[#allocation6 + $0x50] sm:$0xff] }
  0xa7   :  { %v1432_v22 = vpack.c.bf16 %v356_v16, %v353_v15  ;;  %v529_v15 = vld [vmem:[#allocation6 + $0x68] sm:$0xff]  ;;  %v531_v16 = vld [vmem:[#allocation6 + $0x78] sm:$0xff]  ;;  %v544_v44 = vld [vmem:[#allocation6 + $0xe0] sm:$0xff] }
  0xa8   :  { %1399 = vmatpush1.bf16.msra.mxu1 %v1398_v58  ;;  %v185_v58 = vld [vmem:[%s2011_s2] sm:$0x3]  ;;  %v1478_v46 = vpack.c.bf16 %v546_v45, %v544_v44 }
  0xa9   :  { %1347 = vmatpush1.bf16.msra.mxu0 %v1346_v25  ;;  %1401 = vmatprep.subr.bf16.mxu1 %v1400_v59  ;;  %v359_v25 = vld [vmem:[#allocation4 + $0x280] sm:$0xff]  ;;  %v189_v59 = vsub.s32 0, %v188_v56  ;;  %v194_v60 = vrot.slane %v185_v58, %v193_v57  ;;  %v624_v56 = vld [vmem:[#allocation7 + $0x28] sm:$0xff] }
  0xaa   :  { %1349 = vmatprep.subr.bf16.mxu0 %v1348_v28  ;;  %v1434_v28 = vpack.c.bf16 %v308_v24, %v305_v23  ;;  %v1436_v29 = vpack.c.bf16 %v362_v26, %v359_v25  ;;  %v1462_v23 = vpack.c.bf16 %v530_v20, %v528_v19  ;;  %v532_v25 = vld [vmem:[#allocation6 + $0x80] sm:$0xff]  ;;  %v534_v26 = vld [vmem:[#allocation6 + $0x90] sm:$0xff]  ;;  %v1487_v57 = vpack.c.bf16 %v624_v56, %v623_v55  ;;  %v897_v56 = vld [vmem:[#allocation10 + $0x78] sm:$0xff] }
  0xab   :  { %v190_v61 = vrot.slane %v185_v58, %v189_v59  ;;  %v625_v58 = vld [vmem:[#allocation7 + $0x30] sm:$0xff]  ;;  %v626_v59 = vld [vmem:[#allocation7 + $0x38] sm:$0xff]  ;;  %v890_v45 = vld [vmem:[#allocation10 + $0x40] sm:$0xff] }
  0xac   :  { %1403 = vmatpush1.bf16.msra.mxu1 %v1402_v6  ;;  %v896_v55 = vld [vmem:[#allocation10 + $0x70] sm:$0xff] }
  0xad   :  { %1351 = vmatpush1.bf16.msra.mxu0 %v1350_v37  ;;  %1405 = vmatprep.subr.bf16.mxu1 %v1404_v7  ;;  %v320_v37 = vld [vmem:[#allocation4 + $0x148] sm:$0xff] }
  0xae   :  { %1417 = vmatprep.subr.bf16.mxu0 %v1416_v40  ;;  %v1442_v38 = vpack.c.bf16 %v320_v37, %v317_v36  ;;  %v373_v40 = vld [vmem:[#allocation4 + $0x2f0] sm:$0xff]  ;;  %v540_v37 = vld [vmem:[#allocation6 + $0xc0] sm:$0xff] }
  0xaf   :  { %v1412_v42 = vpack.c.bf16 %v373_v40, %v370_v39  ;;  %v545_v40 = vld [vmem:[#allocation6 + $0xe8] sm:$0xff] }
  0xb0   :  { %273 = vmatmul.mubr.f32.vlgmr.msra.gmra.mrb[0].mxu0 %v1924_v43  ;;  %v360_v43 = vld [vmem:[#allocation4 + $0x288] sm:$0xff] }
  0xb1   :  { %1419 = vmatpush3.bf16.msra.mxu0 %v1418_v50  ;;  %v1406_v17 = vpack.c.bf16 %v360_v43, %v357_v8  ;;  %v326_v50 = vld [vmem:[#allocation4 + $0x178] sm:$0xff]  ;;  %v520_v8 = vld [vmem:[#allocation6 + $0x20] sm:$0xff]  ;;  %v522_v43 = vld [vmem:[#allocation6 + $0x30] sm:$0xff] }
  0xb2   :  { %1421 = vmatprep.subr.bf16.mxu0 %v1420_v53  ;;  %v1446_v51 = vpack.c.bf16 %v326_v50, %v323_v49  ;;  %v519_v53 = vld [vmem:[#allocation6 + $0x18] sm:$0xff]  ;;  %v1454_v11 = vpack.c.bf16 %v522_v43, %v520_v8  ;;  %v620_v49 = vld [vmem:[#allocation7 + $0x8] sm:$0xff]  ;;  %v621_v50 = vld [vmem:[#allocation7 + $0x10] sm:$0xff] }
  0xb3   :  { %1407 = vmatpush1.bf16.msra.mxu1 %v1406_v17  ;;  %v1448_v54 = vpack.c.bf16 %v519_v53, %v517_v52  ;;  %v1458_v17 = vpack.c.bf16 %v526_v14, %v524_v13  ;;  %v622_v53 = vld [vmem:[#allocation7 + $0x18] sm:$0xff] }
  0xb4   :  { %1409 = vmatprep.subr.bf16.mxu1 %v1408_v18  ;;  %v1460_v18 = vpack.c.bf16 %v531_v16, %v529_v15  ;;  %v704_v8 = vld [vmem:[%s2015_s6 + $0x18] sm:$0xff]  ;;  %v800_v15 = vld [vmem:[%s2019_s10 + $0x20] sm:$0xff]  ;;  %v801_v16 = vld [vmem:[%s2019_s10 + $0x28] sm:$0xff] }
  0xb5   :  { %1423 = vmatpush3.bf16.msra.mxu0 %v1422_v62  ;;  %v516_v62 = vld [vmem:[#allocation6] sm:$0xff]  ;;  %v799_v13 = vld [vmem:[%s2019_s10 + $0x18] sm:$0xff] }
  0xb6   :  { %1425 = vmatprep.subr.bf16.mxu0 %v1424_v1  ;;  %v521_v1 = vld [vmem:[#allocation6 + $0x28] sm:$0xff]  ;;  %v1450_v5 = vpack.c.bf16 %v518_v63, %v516_v62 }
  0xb7   :  { %1411 = vmatpush1.bf16.msra.mxu1 %v1410_v27  ;;  %v1452_v7 = vpack.c.bf16 %v523_v2, %v521_v1  ;;  %v537_v27 = vld [vmem:[#allocation6 + $0xa8] sm:$0xff] }
  0xb8   :  { %1413 = vmatprep.subr.bf16.mxu1 %v1412_v42  ;;  %v1476_v42 = vpack.c.bf16 %v547_v41, %v545_v40  ;;  %v888_v41 = vld [vmem:[#allocation10 + $0x30] sm:$0xff] }
  0xb9   :  { %1427 = vmatpush3.bf16.msra.mxu0 %v1426_v9  ;;  %v525_v9 = vld [vmem:[#allocation6 + $0x48] sm:$0xff] }
  0xba   :  { %1429 = vmatprep.subr.bf16.mxu0 %v1428_v12  ;;  %v1456_v12 = vpack.c.bf16 %v527_v10, %v525_v9  ;;  %v796_v9 = vld [vmem:[%s2019_s10] sm:$0xff]  ;;  %v797_v10 = vld [vmem:[%s2019_s10 + $0x8] sm:$0xff] }
  0xbb   :  { %1415 = vmatpush1.bf16.msra.mxu1 %v1414_v48  ;;  %v619_v48 = vld [vmem:[#allocation7] sm:$0xff] }
  0xbc   :  { %1449 = vmatprep.subr.bf16.mxu1 %v1448_v54  ;;  %v1481_v52 = vpack.c.bf16 %v620_v49, %v619_v48  ;;  %v1484_v54 = vpack.c.bf16 %v622_v53, %v621_v50  ;;  %v893_v49 = vld [vmem:[#allocation10 + $0x58] sm:$0xff]  ;;  %v895_v53 = vld [vmem:[#allocation10 + $0x68] sm:$0xff] }
  0xbd   :  { %1431 = vmatpush3.bf16.msra.mxu0 %v1430_v21  ;;  %v533_v21 = vld [vmem:[#allocation6 + $0x88] sm:$0xff] }
  0xbe   :  { %1433 = vmatprep.subr.bf16.mxu0 %v1432_v22  ;;  %v535_v22 = vld [vmem:[#allocation6 + $0x98] sm:$0xff] }
  0xbf   :  { %v1464_v24 = vpack.c.bf16 %v535_v22, %v533_v21  ;;  %v802_v21 = vld [vmem:[%s2019_s10 + $0x30] sm:$0xff]  ;;  %v803_v22 = vld [vmem:[%s2019_s10 + $0x38] sm:$0xff] }
  0xc1   :  { %1435 = vmatpush3.bf16.msra.mxu0 %v1434_v28  ;;  %v539_v28 = vld [vmem:[#allocation6 + $0xb8] sm:$0xff] }
  0xc2   :  { %1437 = vmatprep.subr.bf16.mxu0 %v1436_v29  ;;  %v1466_v29 = vpack.c.bf16 %v534_v26, %v532_v25  ;;  %v1468_v30 = vpack.c.bf16 %v539_v28, %v537_v27  ;;  %v882_v26 = vld [vmem:[#allocation10] sm:$0xff]  ;;  %v883_v27 = vld [vmem:[#allocation10 + $0x8] sm:$0xff] }
  0xc5   :  { %1439 = vmatpush3.bf16.msra.mxu0 %v1438_v34  ;;  %v543_v34 = vld [vmem:[#allocation6 + $0xd8] sm:$0xff] }
  0xc6   :  { %1441 = vmatprep.subr.bf16.mxu0 %v1440_v35  ;;  %v1470_v35 = vpack.c.bf16 %v538_v32, %v536_v31  ;;  %v1472_v36 = vpack.c.bf16 %v543_v34, %v541_v33  ;;  %v1511_v32 = vpack.c.bf16 %v883_v27, %v882_v26  ;;  %v884_v34 = vld [vmem:[#allocation10 + $0x10] sm:$0xff]  ;;  %v988_v26 = vld [vmem:[#allocation9 + $0xa0] sm:$0xff] }
  0xc7   :  { %v990_v27 = vld [vmem:[#allocation9 + $0xb0] sm:$0xff] }
  0xc9   :  { %1443 = vmatpush3.bf16.msra.mxu0 %v1442_v38  ;;  %v542_v38 = vld [vmem:[#allocation6 + $0xd0] sm:$0xff] }
  0xca   :  { %1445 = vmatprep.subr.bf16.mxu0 %v1444_v47  ;;  %v1474_v39 = vpack.c.bf16 %v542_v38, %v540_v37  ;;  %v1768_v47 = vmov 0.0   ;;  %v886_v38 = vld [vmem:[#allocation10 + $0x20] sm:$0xff] }
  0xcd   :  { %1447 = vmatpush3.bf16.msra.mxu0 %v1446_v51  ;;  %v1769_v51 = vmov 0.0|0.0  }
  0xce   :  { %1480 = vmatprep.subr.bf16.mxu0 %v1769_v51 }
 0x183   :  { %v274_v0 = vpop.f32.mrb[0].mxu0 }
 0x184   :  { %v276_v3 = vpop.f32.mrb[1].mxu0  ;;  %v275_v6 = vadd.f32 %v274_v0, %v190_v61 }
 0x185   :  { %v277_v4 = vadd.f32 %v276_v3, %v194_v60  ;;  %v1490_v60 = vpack.c.bf16 %v626_v59, %v625_v58  ;;  %v969_v58 = vld [vmem:[#allocation9 + $0x8] sm:$0xff]  ;;  %v971_v59 = vld [vmem:[#allocation9 + $0x18] sm:$0xff] }
 0x187   :  { %439 = vmatprep.mubr.f32.mxu1 %v277_v4  ;;  %510 = vmatprep.mubr.f32.mxu0 %v277_v4  ;;  %v701_v4 = vld [vmem:[%s2015_s6] sm:$0xff] }
 0x188   :  { %440 = vmatmul.mubr.f32.vlgmr.msra.gmra.mrb[0].mxu1 %v275_v6  ;;  %511 = vmatmul.mubr.f32.vlgmr.msra.gmra.mrb[2].mxu0 %v275_v6  ;;  %v703_v6 = vld [vmem:[%s2015_s6 + $0x10] sm:$0xff] }
 0x189   :  { %1451 = vmatpush1.bf16.msra.mxu1 %v1450_v5  ;;  %612 = vmatprep.mubr.f32.mxu1 %v1768_v47  ;;  %v702_v5 = vld [vmem:[%s2015_s6 + $0x8] sm:$0xff]  ;;  %v1496_v43 = vpack.c.bf16 %v704_v8, %v703_v6 }
 0x18a   :  { %1453 = vmatprep.subr.bf16.mxu1 %v1452_v7  ;;  %1482 = vmatpush3.bf16.msra.mxu0 %v1481_v52  ;;  %v1493_v7 = vpack.c.bf16 %v702_v5, %v701_v4  ;;  %v894_v52 = vld [vmem:[#allocation10 + $0x60] sm:$0xff]  ;;  %v974_v5 = vld [vmem:[#allocation9 + $0x30] sm:$0xff]  ;;  %v977_v6 = vld [vmem:[#allocation9 + $0x48] sm:$0xff] }
 0x18b   :  { %1483 = vmatprep.subr.bf16.mxu0 %v1769_v51  ;;  %1220 = vmatprep.mubr.msk.f32.mxu0 %vm1770_vm0, %v1768_v47  ;;  %v972_v4 = vld [vmem:[#allocation9 + $0x20] sm:$0xff] }
 0x18d   :  { %1455 = vmatpush1.bf16.msra.mxu1 %v1454_v11  ;;  %v798_v11 = vld [vmem:[%s2019_s10 + $0x10] sm:$0xff] }
 0x18e   :  { %1457 = vmatprep.subr.bf16.mxu1 %v1456_v12  ;;  %1485 = vmatpush3.bf16.msra.mxu0 %v1484_v54  ;;  %v1499_v12 = vpack.c.bf16 %v797_v10, %v796_v9  ;;  %v1502_v14 = vpack.c.bf16 %v799_v13, %v798_v11  ;;  %v1529_v54 = vpack.c.bf16 %v895_v53, %v894_v52  ;;  %v978_v9 = vld [vmem:[#allocation9 + $0x50] sm:$0xff]  ;;  %v981_v10 = vld [vmem:[#allocation9 + $0x68] sm:$0xff]  ;;  %v983_v11 = vld [vmem:[#allocation9 + $0x78] sm:$0xff] }
 0x18f   :  { %1486 = vmatprep.subr.bf16.mxu0 %v1769_v51  ;;  %v1546_v13 = vpack.c.bf16 %v983_v11, %v981_v10  ;;  %v1004_v52 = vld [vmem:[#allocation9 + $0x120] sm:$0xff]  ;;  %v1006_v53 = vld [vmem:[#allocation9 + $0x130] sm:$0xff] }
 0x190   :  { %v1020_v11 = vld [vmem:[#allocation9 + $0x1a0] sm:$0xff] }
 0x191   :  { %1459 = vmatpush1.bf16.msra.mxu1 %v1458_v17  ;;  %v1505_v17 = vpack.c.bf16 %v801_v16, %v800_v15  ;;  %v982_v15 = vld [vmem:[#allocation9 + $0x70] sm:$0xff]  ;;  %v985_v16 = vld [vmem:[#allocation9 + $0x88] sm:$0xff] }
 0x192   :  { %1461 = vmatprep.subr.bf16.mxu1 %v1460_v18  ;;  %1488 = vmatpush3.bf16.msra.mxu0 %v1487_v57  ;;  %v1532_v57 = vpack.c.bf16 %v897_v56, %v896_v55  ;;  %v1011_v55 = vld [vmem:[#allocation9 + $0x158] sm:$0xff]  ;;  %v1572_v56 = vpack.c.bf16 %v1006_v53, %v1004_v52 }
 0x193   :  { %1489 = vmatprep.subr.bf16.mxu0 %v1769_v51 }
 0x195   :  { %1463 = vmatpush1.bf16.msra.mxu1 %v1462_v23  ;;  %v1508_v23 = vpack.c.bf16 %v803_v22, %v802_v21  ;;  %v986_v21 = vld [vmem:[#allocation9 + $0x90] sm:$0xff]  ;;  %v989_v22 = vld [vmem:[#allocation9 + $0xa8] sm:$0xff] }
 0x196   :  { %1465 = vmatprep.subr.bf16.mxu1 %v1464_v24  ;;  %1491 = vmatpush3.bf16.msra.mxu0 %v1490_v60  ;;  %v1125_v24 = vld [vmem:[%s2016_s7] ss:$0 sm:$0xff] }
 0x197   :  { %1498 = vmatprep.subr.bf16.mxu0 %v1769_v51  ;;  %v968_v60 = vld [vmem:[#allocation9] sm:$0xff] }
 0x199   :  { %1467 = vmatpush1.bf16.msra.mxu1 %v1466_v29 }
 0x19a   :  { %1469 = vmatprep.subr.bf16.mxu1 %v1468_v30 }
 0x19d   :  { %1471 = vmatpush1.bf16.msra.mxu1 %v1470_v35  ;;  %v885_v35 = vld [vmem:[#allocation10 + $0x18] sm:$0xff] }
 0x19e   :  { %1473 = vmatprep.subr.bf16.mxu1 %v1472_v36  ;;  %v1514_v37 = vpack.c.bf16 %v885_v35, %v884_v34  ;;  %v997_v34 = vld [vmem:[#allocation9 + $0xe8] sm:$0xff]  ;;  %v999_v35 = vld [vmem:[#allocation9 + $0xf8] sm:$0xff] }
 0x1a1   :  { %1475 = vmatpush1.bf16.msra.mxu1 %v1474_v39  ;;  %v887_v39 = vld [vmem:[#allocation10 + $0x28] sm:$0xff] }
 0x1a2   :  { %1477 = vmatprep.subr.bf16.mxu1 %v1476_v42  ;;  %v1517_v40 = vpack.c.bf16 %v887_v39, %v886_v38  ;;  %v889_v42 = vld [vmem:[#allocation10 + $0x38] sm:$0xff]  ;;  %v996_v38 = vld [vmem:[#allocation9 + $0xe0] sm:$0xff]  ;;  %v998_v39 = vld [vmem:[#allocation9 + $0xf0] sm:$0xff] }
 0x1a3   :  { %v1520_v44 = vpack.c.bf16 %v889_v42, %v888_v41  ;;  %v1003_v41 = vld [vmem:[#allocation9 + $0x118] sm:$0xff]  ;;  %v1564_v42 = vpack.c.bf16 %v998_v39, %v996_v38 }
 0x1a5   :  { %1479 = vmatpush1.bf16.msra.mxu1 %v1478_v46  ;;  %v891_v46 = vld [vmem:[#allocation10 + $0x48] sm:$0xff] }
 0x1a6   :  { %1492 = vmatprep.subr.bf16.mxu1 %v1769_v51  ;;  %v1523_v48 = vpack.c.bf16 %v891_v46, %v890_v45  ;;  %v1000_v45 = vld [vmem:[#allocation9 + $0x100] sm:$0xff]  ;;  %v1002_v46 = vld [vmem:[#allocation9 + $0x110] sm:$0xff] }
 0x25b   :  { %v441_v61 = vpop.f32.mrb[0].mxu1  ;;  %v1161_v62 = vpop.f32.mrb[2].mxu0 }
 0x25c   :  { %v1939_v63 = vpop.f32.mrb[1].mxu1  ;;  %v1162_v0 = vpop.f32.mrb[3].mxu0 }
 0x25d   :  { %v1163_v1 = vadd.f32 %v1162_v0, %v1161_v62  ;;  %v970_v62 = vld [vmem:[#allocation9 + $0x10] sm:$0xff]  ;;  %v973_v0 = vld [vmem:[#allocation9 + $0x28] sm:$0xff] }
 0x25f   :  { %613 = vmatmul.mubr.f32.vlgmr.msra.gmra.mrb[2].mxu1 %v1163_v1  ;;  %v975_v1 = vld [vmem:[#allocation9 + $0x38] sm:$0xff] }
 0x260   :  { %1231 = vmatprep.mubr.msk.f32.mxu1 %vm1770_vm0, %v1768_v47  ;;  %1494 = vmatpush3.bf16.msra.mxu1 %v1493_v7  ;;  %v979_v7 = vld [vmem:[#allocation9 + $0x58] sm:$0xff] }
 0x261   :  { %1495 = vmatprep.subr.bf16.mxu1 %v1769_v51  ;;  %v1542_v8 = vpack.c.bf16 %v979_v7, %v977_v6  ;;  %v1016_v7 = vld [vmem:[#allocation9 + $0x180] sm:$0xff] }
 0x264   :  { %1497 = vmatpush3.bf16.msra.mxu1 %v1496_v43  ;;  %v976_v43 = vld [vmem:[#allocation9 + $0x40] sm:$0xff] }
 0x332   :  { %v614_v2 = vpop.f32.mrb[2].mxu1 }
 0x333   :  { %v616_v3 = vpop.f32.mrb[3].mxu1 }
 0x334   :  { %1221 = vmatmul.mubr.msk.f32.vlgmr.msra.gmra.mrb[4].mxu0 %vm627_vm1, %v616_v3  ;;  %v1538_v3 = vpack.c.bf16 %v975_v1, %v973_v0  ;;  %v1012_v1 = vld [vmem:[#allocation9 + $0x160] sm:$0xff] }
 0x335   :  { %1250 = vmatprep.mubr.msk.f32.mxu0 %vm1770_vm0, %v1768_v47  ;;  %1500 = vmatpush3.bf16.msra.mxu0 %v1499_v12  ;;  %v1544_v12 = vpack.c.bf16 %v978_v9, %v976_v43  ;;  %v1023_v43 = vld [vmem:[#allocation9 + $0x1b8] sm:$0xff] }
 0x336   :  { %1501 = vmatprep.subr.bf16.mxu0 %v1769_v51 }
 0x339   :  { %1503 = vmatpush3.bf16.msra.mxu0 %v1502_v14  ;;  %v980_v14 = vld [vmem:[#allocation9 + $0x60] sm:$0xff] }
 0x33a   :  { %1504 = vmatprep.subr.bf16.mxu0 %v1769_v51 }
 0x33d   :  { %1506 = vmatpush3.bf16.msra.mxu0 %v1505_v17  ;;  %v987_v17 = vld [vmem:[#allocation9 + $0x98] sm:$0xff] }
 0x33e   :  { %1507 = vmatprep.subr.bf16.mxu0 %v1769_v51 }
 0x341   :  { %1509 = vmatpush3.bf16.msra.mxu0 %v1508_v23  ;;  %v991_v23 = vld [vmem:[#allocation9 + $0xb8] sm:$0xff] }
 0x342   :  { %1510 = vmatprep.subr.bf16.mxu0 %v1769_v51 }
 0x407   :  { %v697_v18 = vpop.f32.mrb[4].mxu0 }
 0x408   :  { %792 = vrot.lane.b32.xlu1 %v697_v18, %s1771_s15  ;;  %713 = vrot.lane.b32.xlu0 %v697_v18, %s1772_s16  ;;  %v1222_v19 = vpop.f32.mrb[5].mxu0 }
 0x409   :  { %v1550_v19 = vpack.c.bf16 %v987_v17, %v985_v16  ;;  %v1024_v17 = vld [vmem:[#allocation9 + $0x1c0] sm:$0xff] }
 0x40c   :  { %805 = vrot.lane.b32.xlu1 %v614_v2, %s1772_s16  ;;  %788 = vrot.lane.b32.xlu0 %v697_v18, %s1773_s8  ;;  %v1536_v2 = vpack.c.bf16 %v970_v62, %v968_v60  ;;  %v1548_v18 = vpack.c.bf16 %v982_v15, %v980_v14  ;;  %v1013_v60 = vld [vmem:[#allocation9 + $0x168] sm:$0xff]  ;;  %v1027_v14 = vld [vmem:[#allocation9 + $0x1d8] sm:$0xff] }
 0x47a   :  { %v714_v20 = vpop.permute.xlu0 %713  ;;  %v793_v33 = vpop.permute.xlu1 %792 }
 0x47b   :  { %1232 = vmatmul.mubr.msk.f32.vlgmr.msra.gmra.mrb[4].mxu1 %vm715_vm2, %v714_v20  ;;  %v984_v20 = vld [vmem:[#allocation9 + $0x80] sm:$0xff] }
 0x47c   :  { %1096 = vmatprep.mubr.f32.mxu1 %v441_v61  ;;  %v1534_v61 = vpack.c.bf16 %v971_v59, %v969_v58  ;;  %v1008_v58 = vld [vmem:[#allocation9 + $0x140] sm:$0xff]  ;;  %v1010_v59 = vld [vmem:[#allocation9 + $0x150] sm:$0xff] }
 0x47d   :  { %v1576_v62 = vpack.c.bf16 %v1010_v59, %v1008_v58 }
 0x47e   :  { %v789_v30 = vpop.permute.xlu0 %788  ;;  %1535 = vmatprep.subr.bf16.mxu1 %v1534_v61  ;;  %v1015_v61 = vld [vmem:[#allocation9 + $0x178] sm:$0xff] }
 0x47f   :  { %1537 = vmatpush1.bf16.msra.mxu1 %v1536_v2  ;;  %v1578_v0 = vpack.c.bf16 %v1015_v61, %v1013_v60  ;;  %v1014_v2 = vld [vmem:[#allocation9 + $0x170] sm:$0xff] }
 0x480   :  { %1539 = vmatprep.subr.bf16.mxu1 %v1538_v3  ;;  %v1017_v3 = vld [vmem:[#allocation9 + $0x188] sm:$0xff] }
 0x54e   :  { %v784_v25 = vpop.f32.mrb[4].mxu1 }
 0x54f   :  { %v785_v28 = vadd.f32 %v1125_v24, %v784_v25  ;;  %v1233_v29 = vpop.f32.mrb[5].mxu1  ;;  %v1552_v24 = vpack.c.bf16 %v986_v21, %v984_v20  ;;  %v1554_v25 = vpack.c.bf16 %v991_v23, %v989_v22  ;;  %v1031_v20 = vld [vmem:[#allocation9 + $0x1f8] sm:$0xff]  ;;  %v806_v23 = vpop.permute.xlu1 %805 }
 0x550   :  { %v995_v29 = vld [vmem:[#allocation9 + $0xd8] sm:$0xff] }
 0x551   :  { %v791_v31 = vadd.f32 %v789_v30, %v785_v28  ;;  %v993_v28 = vld [vmem:[#allocation9 + $0xc8] sm:$0xff]  ;;  %v1556_v30 = vpack.c.bf16 %v990_v27, %v988_v26 }
 0x553   :  { %v795_v36 = vsel %vm715_vm2, %v791_v31, %v793_v33  ;;  %v1558_v31 = vpack.c.bf16 %v995_v29, %v993_v28  ;;  %v994_v33 = vld [vmem:[#allocation9 + $0xd0] sm:$0xff]  ;;  %v1028_v28 = vld [vmem:[#allocation9 + $0x1e0] sm:$0xff] }
 0x554   :  { %1251 = vmatmul.mubr.msk.f32.vlgmr.msra.gmra.mrb[6].mxu0 %vm627_vm1, %v795_v36  ;;  %v1030_v29 = vld [vmem:[#allocation9 + $0x1f0] sm:$0xff] }
 0x555   :  { %1512 = vmatpush3.bf16.msra.mxu0 %v1511_v32  ;;  %1285 = vmatprep.mubr.msk.f32.mxu0 %vm1770_vm0, %v1768_v47  ;;  %v892_v47 = vld [vmem:[#allocation10 + $0x50] sm:$0xff]  ;;  %v992_v32 = vld [vmem:[#allocation9 + $0xc0] sm:$0xff] }
 0x556   :  { %1513 = vmatprep.subr.bf16.mxu0 %v1769_v51  ;;  %v1526_v50 = vpack.c.bf16 %v893_v49, %v892_v47  ;;  %v1560_v36 = vpack.c.bf16 %v994_v33, %v992_v32  ;;  %v1007_v47 = vld [vmem:[#allocation9 + $0x138] sm:$0xff]  ;;  %v1568_v49 = vpack.c.bf16 %v1002_v46, %v1000_v45 }
 0x559   :  { %1515 = vmatpush3.bf16.msra.mxu0 %v1514_v37  ;;  %v1562_v37 = vpack.c.bf16 %v999_v35, %v997_v34 }
 0x55a   :  { %1516 = vmatprep.subr.bf16.mxu0 %v1769_v51 }
 0x55d   :  { %1518 = vmatpush3.bf16.msra.mxu0 %v1517_v40  ;;  %v1001_v40 = vld [vmem:[#allocation9 + $0x108] sm:$0xff] }
 0x55e   :  { %1519 = vmatprep.subr.bf16.mxu0 %v1769_v51 }
 0x561   :  { %1521 = vmatpush3.bf16.msra.mxu0 %v1520_v44  ;;  %v1566_v44 = vpack.c.bf16 %v1003_v41, %v1001_v40 }
 0x562   :  { %1522 = vmatprep.subr.bf16.mxu0 %v1769_v51 }
 0x565   :  { %1524 = vmatpush3.bf16.msra.mxu0 %v1523_v48  ;;  %v1005_v48 = vld [vmem:[#allocation9 + $0x128] sm:$0xff] }
 0x566   :  { %1525 = vmatprep.subr.bf16.mxu0 %v1769_v51 }
 0x569   :  { %1527 = vmatpush3.bf16.msra.mxu0 %v1526_v50  ;;  %v1570_v50 = vpack.c.bf16 %v1007_v47, %v1005_v48 }
 0x56a   :  { %1528 = vmatprep.subr.bf16.mxu0 %v1769_v51 }
 0x56d   :  { %1530 = vmatpush3.bf16.msra.mxu0 %v1529_v54  ;;  %v1009_v54 = vld [vmem:[#allocation9 + $0x148] sm:$0xff] }
 0x56e   :  { %1531 = vmatprep.subr.bf16.mxu0 %v1769_v51  ;;  %v1540_v51 = vpack.c.bf16 %v974_v5, %v972_v4  ;;  %v1019_v4 = vld [vmem:[#allocation9 + $0x198] sm:$0xff]  ;;  %v1580_v5 = vpack.c.bf16 %v1014_v2, %v1012_v1 }
 0x56f   :  { %v1582_v6 = vpack.c.bf16 %v1019_v4, %v1017_v3 }
 0x570   :  { %1541 = vmatpush1.bf16.msra.mxu1 %v1540_v51  ;;  %v1018_v51 = vld [vmem:[#allocation9 + $0x190] sm:$0xff] }
 0x571   :  { %1533 = vmatpush3.bf16.msra.mxu0 %v1532_v57  ;;  %1543 = vmatprep.subr.bf16.mxu1 %v1542_v8  ;;  %v1574_v57 = vpack.c.bf16 %v1011_v55, %v1009_v54  ;;  %v1021_v8 = vld [vmem:[#allocation9 + $0x1a8] sm:$0xff]  ;;  %v1584_v9 = vpack.c.bf16 %v1018_v51, %v1016_v7 }
 0x572   :  { %v1586_v10 = vpack.c.bf16 %v1023_v43, %v1021_v8 }
 0x574   :  { %1545 = vmatpush1.bf16.msra.mxu1 %v1544_v12  ;;  %v1022_v12 = vld [vmem:[#allocation9 + $0x1b0] sm:$0xff] }
 0x575   :  { %1547 = vmatprep.subr.bf16.mxu1 %v1546_v13  ;;  %v1025_v13 = vld [vmem:[#allocation9 + $0x1c8] sm:$0xff]  ;;  %v1588_v15 = vpack.c.bf16 %v1022_v12, %v1020_v11 }
 0x576   :  { %v1590_v16 = vpack.c.bf16 %v1027_v14, %v1025_v13 }
 0x578   :  { %1549 = vmatpush1.bf16.msra.mxu1 %v1548_v18  ;;  %v1026_v18 = vld [vmem:[#allocation9 + $0x1d0] sm:$0xff] }
 0x579   :  { %1551 = vmatprep.subr.bf16.mxu1 %v1550_v19  ;;  %v1029_v19 = vld [vmem:[#allocation9 + $0x1e8] sm:$0xff]  ;;  %v1592_v21 = vpack.c.bf16 %v1026_v18, %v1024_v17 }
 0x57a   :  { %v1594_v22 = vpack.c.bf16 %v1031_v20, %v1029_v19 }
 0x57c   :  { %1553 = vmatpush1.bf16.msra.mxu1 %v1552_v24 }
 0x57d   :  { %1555 = vmatprep.subr.bf16.mxu1 %v1554_v25 }
 0x580   :  { %1557 = vmatpush1.bf16.msra.mxu1 %v1556_v30  ;;  %v1596_v30 = vpack.c.bf16 %v1030_v29, %v1028_v28 }
 0x581   :  { %1559 = vmatprep.subr.bf16.mxu1 %v1558_v31 }
 0x584   :  { %1561 = vmatpush1.bf16.msra.mxu1 %v1560_v36 }
 0x585   :  { %1563 = vmatprep.subr.bf16.mxu1 %v1562_v37 }
 0x588   :  { %1565 = vmatpush1.bf16.msra.mxu1 %v1564_v42 }
 0x589   :  { %1567 = vmatprep.subr.bf16.mxu1 %v1566_v44 }
 0x58c   :  { %1569 = vmatpush1.bf16.msra.mxu1 %v1568_v49 }
 0x58d   :  { %1571 = vmatprep.subr.bf16.mxu1 %v1570_v50 }
 0x590   :  { %1573 = vmatpush1.bf16.msra.mxu1 %v1572_v56 }
 0x591   :  { %1575 = vmatprep.subr.bf16.mxu1 %v1574_v57 }
 0x594   :  { %1577 = vmatpush1.bf16.msra.mxu1 %v1576_v62 }
 0x595   :  { %1579 = vmatprep.subr.bf16.mxu1 %v1578_v0 }
 0x598   :  { %1581 = vmatpush1.bf16.msra.mxu1 %v1580_v5 }
 0x599   :  { %1583 = vmatprep.subr.bf16.mxu1 %v1582_v6 }
 0x59c   :  { %1585 = vmatpush1.bf16.msra.mxu1 %v1584_v9 }
 0x59d   :  { %1587 = vmatprep.subr.bf16.mxu1 %v1586_v10 }
 0x5a0   :  { %1589 = vmatpush1.bf16.msra.mxu1 %v1588_v15 }
 0x5a1   :  { %1591 = vmatprep.subr.bf16.mxu1 %v1590_v16 }
 0x5a4   :  { %1593 = vmatpush1.bf16.msra.mxu1 %v1592_v21 }
 0x5a5   :  { %1595 = vmatprep.subr.bf16.mxu1 %v1594_v22 }
 0x5a8   :  { %1597 = vmatpush1.bf16.msra.mxu1 %v1596_v30 }
 0x627   :  { %v877_v24 = vpop.f32.mrb[6].mxu0 }
 0x628   :  { %v878_v25 = vadd.f32 %v877_v24, %v806_v23  ;;  %v1252_v26 = vpop.f32.mrb[7].mxu0 }
 0x62a   :  { %v881_v27 = vsel %vm627_vm1, %v878_v25, %v806_v23 }
 0x62b   :  { %1286 = vmatmul.mubr.f32.vlgmr.msra.gmra.mrb[8].mxu0 %v881_v27 }
 0x6fe   :  { %v964_v31 = vpop.f32.mrb[8].mxu0 }
 0x6ff   :  { %v965_v32 = vadd.f32 %v964_v31, %v1939_v63  ;;  %v1287_v33 = vpop.f32.mrb[9].mxu0 }
 0x701   :  { %1097 = vmatmul.mubr.f32.vlgmr.msra.gmra.mrb[6].mxu1 %v965_v32 }
 0x7d4   :  { %v1098_v34 = vpop.f32.mrb[6].mxu1 }
 0x7d5   :  { %v1100_v35 = vpop.f32.mrb[7].mxu1 }
 0x7d6   :  { %v1105_v36 = vcombine.low %v1098_v34, %v1100_v35 }
 0x7d8   :  { %1128 = vst.sshfl [vmem:[%s2020_s11] sm:$0x33 pattern:$0x76325410] %v1105_v36 }
 0x7d9   :  { %1119 = vsyncpa [#allocation3], 1 }
 0x7da   :  { %1120 = vsyncpa [#allocation5], 1 }
 0x7db   :  { %1121 = vsyncpa [#allocation8], 1 }
 0x7dc   :  { %1122 = vsyncpa [#allocation11], 1 }

// kernel: _lambda_.3
= control target key start
LH: loop header
LB: loop body
LE: loop exit
PB: predicated region body
PF: predicated region fallthrough
CT: control target
= control target key end

     0   :  { %12 = vsyncpa [#allocation3], 0  ;;  %s1710_s0 = inlined_call_operand.vmem [shape: f32[2,8,32], index: 0, kind: input, shape index: {}]   ;;  %s1711_s1 = inlined_call_operand.vmem [shape: bf16[32,96], index: 1, kind: input, shape index: {}]   ;;  %s1712_s2 = inlined_call_operand.vmem [shape: f32[1,96], index: 2, kind: input, shape index: {}]   ;;  %s1713_s3 = inlined_call_operand.vmem [shape: bf16[4,8,32], index: 3, kind: input, shape index: {}]   ;;  %s1714_s4 = inlined_call_operand.vmem [shape: f32[1,32], index: 4, kind: input, shape index: {}]   ;;  %s1715_s5 = inlined_call_operand.vmem [shape: bf16[32,32], index: 5, kind: input, shape index: {}]   ;;  %s1716_s6 = inlined_call_operand.vmem [shape: f32[1,32], index: 6, kind: input, shape index: {}]   ;;  %s1717_s7 = inlined_call_operand.hbm [shape: f32[2,8,32], index: 7, kind: output, shape index: {}]  }
   0x1   :  { %14 = vsyncpa [#allocation3 + $0x1], 0  ;;  %s1475_s24 = smov 0   ;;  %s1477_s25 = smov 0  }
   0x2   :  { %s1479_s26 = smov 0   ;;  %s1481_s27 = smov 0  }
   0x3 LB: > { %s1496_s28 = sadd.s32 4294967295, %s1425_s27   ;;  %s1148_s29 = sadd.s32 4294967294, %s1425_s27   ;;  %s1425_s27 = sphi %s1481_s27, %s1723_s27   ;;  %s1421_s26 = sphi %s1479_s26, %s1722_s26   ;;  %s1417_s25 = sphi %s1477_s25, %s1721_s25   ;;  %s1413_s24 = sphi %s1475_s24, %s1720_s24  }
   0x4   : > { %s1500_s30 = sadd.s32 1, %s1425_s27   ;;  %s179_s8 = sadd.s32 1, %s1421_s26 }
   0x5   : > { %s176_s9 = ssub.s32 %s1425_s27, %s1500_s30  ;;  %p189_p0 = scmp.ne.s32.totalorder %s1421_s26, %s1417_s25 }
   0x6   : > { %p177_p1 = scmp.eq.s32.totalorder %s176_s9, 0  ;;  %p190_p2 = scmp.eq.s32.totalorder %s1496_s28, 1 }
   0x7   : > { %p195_p3 = scmp.ne.s32.totalorder %s1417_s25, %s1413_s24  ;;  %p196_p4 = scmp.eq.s32.totalorder %s1148_s29, 1 }
   0x8   : > { %s1511_s10 = scalar_select %p177_p1, %s1421_s26, %s179_s8  }
   0x9   : > { %p1513_p5 = por %p190_p2, %p189_p0  ;;  %p1517_p6 = por %p196_p4, %p195_p3 }
   0xa   : > { %p1151_p7 = scmp.ge.s32.totalorder %s1425_s27, 1  ;;  %p239_p8 = scmp.lt.s32.totalorder %s1425_s27, 3 }
   0xc   : > { %p240_p9 = pnand %p1151_p7, %p239_p8 }
   0xd   : > { %v1343_v0 = vld [vmem:[%s1711_s1] sm:$0xff] (!%p240_p9)   ;;  %v1427_v1 = vmov (!%p240_p9), 0.0   ;;  %v1344_v2 = vld [vmem:[%s1711_s1 + $0x8] sm:$0xff] (!%p240_p9)   ;;  %vm1428_vm0 = vmmov (!%p240_p9), 0   ;;  %p270_p10 = scmp.lt.s32.totalorder (!%p240_p9), %s1496_s28, 1  ;;  %vm300_vm1 = vcmask (!%p240_p9), 261120  }
   0xe   : > { %243 = sbr.rel (%p240_p9) target bundleno = 1681 (0x691), region = 48  ;;  %1209 = vmatprep.subr.bf16.mxu0 (!%p240_p9), %v1427_v1  ;;  %1217 = vmatprep.subr.bf16.mxu1 (!%p240_p9), %v1427_v1  ;;  %v1154_v5 = vld [vmem:[%s1712_s2] ss:$0 sm:$0xff] (!%p240_p9)  ;;  %s1429_s29 = smov (!%p240_p9), 104   ;;  %vm361_vm2 = vcmask (!%p240_p9), 64512   ;;  %vm612_vm3 = vcmask (!%p240_p9), 1043456  }
   0xf   : > { %1210 = vmatpush3.bf16.msra.mxu0 (!%p240_p9), %v1343_v0  ;;  %1213 = vmatprep.mubr.msk.bf16.mxu0 (!%p240_p9), %vm1428_vm0, %v1427_v1  ;;  %s1430_s8 = smov (!%p240_p9), 120   ;;  %s1431_s9 = smov (!%p240_p9), 112  }
  0x10   : > { %1211 = vmatprep.subr.bf16.mxu0 (!%p240_p9), %v1427_v1  ;;  %1219 = vmatprep.mubr.msk.bf16.mxu1 (!%p240_p9), %vm1428_vm0, %v1427_v1  ;;  %s1432_s13 = smov (!%p240_p9), 96   ;;  %s1433_s14 = smov (!%p240_p9), 64  }
  0x11   : > { %s267_s15 = sand.u32 (!%p240_p9), 1, %s1417_s25   ;;  %s1176_s19 = sshll.u32 (!%p240_p9), %s1496_s28, 7 }
  0x12   : > { %s1152_s16 = sshll.u32 (!%p240_p9), %s267_s15, 3 }
  0x13   : > { %1212 = vmatpush3.bf16.msra.mxu0 (!%p240_p9), %v1344_v2  ;;  %s269_s20 = scalar_lea.vmem (!%p240_p9), [#allocation2], %s1152_s16 }
  0x14   : > { %1223 = vmatprep.subr.bf16.mxu0 (!%p240_p9), %v1427_v1 }
  0x15   : > { %s271_s17 = scalar_select %p270_p10, %s1496_s28, 1 }
  0x16   : > { %s1076_s28 = scalar_lea.sflag [#allocation3], %s267_s15 }
  0x17   : > { %s1153_s18 = sshll.u32 %s271_s17, 3 }
  0x18   : > { %s273_s21 = scalar_lea.vmem %s1710_s0, %s1153_s18 }
  0x19   : > { %v275_v3 = vld [vmem:[%s273_s21] sm:$0xff]  ;;  %s1089_s21 = sshll.u32 %s269_s20, 4  ;;  %s1669_s21 = int_to_ptr.vmem [resolvable:$true] %s1089_s21 }
  0x1a   : > { %v276_v4 = vpack.c.bf16 %v275_v3, %v275_v3 }
  0x1c   : > { %1214 = vmatmul.mubr.msk.bf16.vlgmr.msra.gmra.mrb[0].mxu0 %vm300_vm1, %v276_v4 }
  0x1d   : > { %1225 = vmatprep.mubr.msk.bf16.mxu0 %vm1428_vm0, %v1427_v1 }
  0xef   : > { %v338_v6 = vpop.f32.mrb[0].mxu0 }
  0xf0   : > { %v339_v7 = vadd.f32 %v1154_v5, %v338_v6  ;;  %v1215_v8 = vpop.f32.mrb[1].mxu0 }
  0xf1   : > { %v341_v9 = vpop.f32.mrb[2].mxu0 }
  0xf2   : > { %351 = vrot.lane.b32.xlu1 %v339_v7, %s1429_s29  ;;  %345 = vrot.lane.b32.xlu0 %v339_v7, %s1430_s8  ;;  %v1216_v10 = vpop.f32.mrb[3].mxu0  ;;  %v1548_v11 = vpack.c.bf16 %v339_v7, %v339_v7  ;;  %s1667_s29 = scalar_lea.hbm %s1717_s7, %s1176_s19  ;;  %s1363_s8 = scalar_lea.vmem %s1669_s21, 128 }
  0xf3   : > { %p1364_p11 = scmp.ne.s32.totalorder %s1669_s21, %s1363_s8 }
  0xf5   : > { %p1365_p12 = pnand %p1364_p11, %p1513_p5 }
  0xf6   : > { %348 = vrot.lane.b32.xlu0 %v339_v7, %s1431_s9  ;;  %359 = vrot.lane.b32.xlu1 %v1548_v11, %s1432_s13  ;;  %s1434_s9 = smov [#allocation2]  }
  0xf7   : > { %p1366_p13 = pneg %p1365_p12 }
 0x164   : > { %v352_v12 = vpop.permute.xlu1 %351  ;;  %v346_v13 = vpop.permute.xlu0 %345 }
 0x165   : > { %v355_v14 = vpack.c.bf16 %v346_v13, %v346_v13  ;;  %v1551_v17 = vpack.c.bf16 %v352_v12, %v352_v12 }
 0x167   : > { %409 = vrot.lane.b32.xlu0 %v355_v14, %s1432_s13 }
 0x168   : > { %v349_v15 = vpop.permute.xlu0 %348  ;;  %v360_v16 = vpop.permute.xlu1 %359 }
 0x169   : > { %v1553_v18 = vpack.c.bf16 %v349_v15, %v349_v15  ;;  %v366_v19 = vsel %vm361_vm2, %v360_v16, 0 }
 0x16a   : > { %1218 = vmatpush3.bf16.xpose.msra.mxu1 %v366_v19 }
 0x16b   : > { %507 = vrot.lane.b32.xlu0 %v1551_v17, %s1432_s13  ;;  %458 = vrot.lane.b32.xlu1 %v1553_v18, %s1432_s13  ;;  %s1367_s13 = sshll.u32 %s1434_s9, 4  ;;  %s1368_s13 = int_to_ptr.vmem [resolvable:$false] %s1367_s13 }
 0x16c   : > { %1229 = vmatprep.subr.bf16.mxu1 %v1427_v1  ;;  %p1370_p0 = scmp.lt.s32.totalorder %s1669_s21, %s1368_s13 }
 0x171   : > { %1220 = vmatmul.mubr.msk.bf16.vlgmr.msra.gmra.mrb[0].mxu1 %vm361_vm2, %v1548_v11 }
 0x172   : > { %1231 = vmatprep.mubr.msk.bf16.mxu1 %vm1428_vm0, %v1427_v1 }
 0x1d9   : > { %v410_v20 = vpop.permute.xlu0 %409 }
 0x1da   : > { %v415_v21 = vsel %vm361_vm2, %v410_v20, 0 }
 0x1db   : > { %1224 = vmatpush3.bf16.xpose.msra.mxu0 %v415_v21 }
 0x1dc   : > { %1235 = vmatprep.subr.bf16.mxu0 %v1427_v1 }
 0x1dd   : > { %v459_v22 = vpop.permute.xlu1 %458  ;;  %v508_v24 = vpop.permute.xlu0 %507 }
 0x1de   : > { %v464_v23 = vsel %vm361_vm2, %v459_v22, 0  ;;  %v513_v25 = vsel %vm361_vm2, %v508_v24, 0 }
 0x1df   : > { %1230 = vmatpush3.bf16.xpose.msra.mxu1 %v464_v23 }
 0x1e0   : > { %1241 = vmatprep.subr.bf16.mxu1 %v1427_v1 }
 0x1e2   : > { %1226 = vmatmul.mubr.msk.bf16.vlgmr.msra.gmra.mrb[4].mxu0 %vm361_vm2, %v355_v14 }
 0x1e3   : > { %1236 = vmatpush3.bf16.xpose.msra.mxu0 %v513_v25  ;;  %1237 = vmatprep.mubr.msk.bf16.mxu0 %vm1428_vm0, %v1427_v1  ;;  %v804_v25 = vld [vmem:[%s1713_s3] sm:$0xf] }
 0x1e4   : > { %1247 = vmatprep.subr.bf16.mxu0 %v1427_v1 }
 0x1e6   : > { %1232 = vmatmul.mubr.msk.bf16.vlgmr.msra.gmra.mrb[4].mxu1 %vm361_vm2, %v1553_v18 }
 0x1e7   : > { %1243 = vmatprep.mubr.msk.bf16.mxu1 %vm1428_vm0, %v1427_v1 }
 0x1ea   : > { %1238 = vmatmul.mubr.msk.bf16.vlgmr.msra.gmra.mrb[8].mxu0 %vm361_vm2, %v1551_v17 }
 0x1eb   : > { %1249 = vmatprep.mubr.msk.bf16.mxu0 %vm1428_vm0, %v1427_v1 }
 0x244   : > { %v402_v26 = vpop.f32.mrb[0].mxu1 }
 0x245   : > { %v555_v27 = vmul.f32 0.35355338, %v402_v26  ;;  %v1221_v28 = vpop.f32.mrb[1].mxu1 }
 0x246   : > { %v405_v29 = vpop.f32.mrb[2].mxu1 }
 0x247   : > { %v1222_v30 = vpop.f32.mrb[3].mxu1  ;;  %v559_v31 = vsel %vm361_vm2, %v555_v27, -inf  ;;  %v812_v29 = vsel %vm612_vm3, %v804_v25, 0 }
 0x248   : > { %560 = vmax.xlane.f32.xlu1 %v559_v31  ;;  %v805_v31 = vld [vmem:[%s1713_s3 + $0x4] sm:$0xf] }
 0x2b5   : > { %v451_v32 = vpop.f32.mrb[4].mxu0 }
 0x2b6   : > { %v556_v33 = vmul.f32 0.35355338, %v451_v32  ;;  %v1227_v34 = vpop.f32.mrb[5].mxu0 }
 0x2b7   : > { %v454_v35 = vpop.f32.mrb[6].mxu0  ;;  %v858_v34 = vsel %vm612_vm3, %v805_v31, 0 }
 0x2b8   : > { %v1228_v36 = vpop.f32.mrb[7].mxu0  ;;  %v562_v37 = vsel %vm361_vm2, %v556_v33, -inf  ;;  %v806_v35 = vld [vmem:[%s1713_s3 + $0x8] sm:$0xf] }
 0x2b9   : > { %v500_v38 = vpop.f32.mrb[4].mxu1  ;;  %563 = vmax.xlane.f32.xlu0 %v562_v37 }
 0x2ba   : > { %v557_v39 = vmul.f32 0.35355338, %v500_v38  ;;  %v1233_v40 = vpop.f32.mrb[5].mxu1 }
 0x2bb   : > { %v503_v41 = vpop.f32.mrb[6].mxu1 }
 0x2bc   : > { %v1234_v42 = vpop.f32.mrb[7].mxu1  ;;  %v565_v43 = vsel %vm361_vm2, %v557_v39, -inf }
 0x2bd   : > { %566 = vmax.xlane.f32.xlu0 %v565_v43  ;;  %v549_v44 = vpop.f32.mrb[8].mxu0  ;;  %v807_v42 = vld [vmem:[%s1713_s3 + $0xc] sm:$0xf] }
 0x2be   : > { %v558_v45 = vmul.f32 0.35355338, %v549_v44  ;;  %v1239_v46 = vpop.f32.mrb[9].mxu0 }
 0x2bf   : > { %v552_v47 = vpop.f32.mrb[10].mxu0  ;;  %v950_v46 = vsel %vm612_vm3, %v807_v42, 0 }
 0x2c0   : > { %v1240_v48 = vpop.f32.mrb[11].mxu0  ;;  %v568_v49 = vsel %vm361_vm2, %v558_v45, -inf }
 0x2c1   : > { %569 = vmax.xlane.f32.xlu1 %v568_v49 }
 0x2d2   : > { %656 = vrot.lane.b32.xlu1 %v355_v14, %s1433_s14 }
 0x2d3   : > { %607 = vrot.lane.b32.xlu0 %v1548_v11, %s1433_s14 }
 0x2d5   : > { %v561_v50 = vpop.xlane.xlu1 %560 }
 0x2d6   : > { %v571_v51 = vsub.f32 %v555_v27, %v561_v50 }
 0x2d8   : > { %v575_v52 = vmul.f32 1.442695, %v571_v51 }
 0x2da   : > { %1347 = vpow2.f32 %v575_v52 }
 0x2e4   : > { %v1348_v53 = vpop.eup %1347 }
 0x2e5   : > { %v583_v54 = vsel %vm361_vm2, %v1348_v53, 0.0 }
 0x2f2   : > { %584 = vadd.xlane.f32.xlu0 %v583_v54 }
 0x346   : > { %v564_v55 = vpop.xlane.xlu0 %563 }
 0x347   : > { %v572_v56 = vsub.f32 %v556_v33, %v564_v55 }
 0x349   : > { %v577_v57 = vmul.f32 1.442695, %v572_v56 }
 0x34a   : > { %v567_v58 = vpop.xlane.xlu0 %566 }
 0x34b   : > { %1349 = vpow2.f32 %v577_v57  ;;  %v573_v59 = vsub.f32 %v557_v39, %v567_v58  ;;  %v904_v39 = vsel %vm612_vm3, %v806_v35, 0 }
 0x34d   : > { %v579_v60 = vmul.f32 1.442695, %v573_v59  ;;  %v1345_v59 = vld [vmem:[%s1715_s5] sm:$0xff]  }
 0x34e   : > { %v608_v61 = vpop.permute.xlu0 %607  ;;  %v570_v62 = vpop.xlane.xlu1 %569 }
 0x34f   : > { %1351 = vpow2.f32 %v579_v60  ;;  %v614_v63 = vsel %vm612_vm3, %v608_v61, 0  ;;  %v574_v0 = vsub.f32 %v558_v45, %v570_v62  ;;  %v1346_v60 = vld [vmem:[%s1715_s5 + $0x8] sm:$0xff]  }
 0x350   : > { %1242 = vmatpush3.bf16.msra.mxu1 %v614_v63 }
 0x351   : > { %v581_v2 = vmul.f32 1.442695, %v574_v0  ;;  %1253 = vmatprep.subr.bf16.mxu1 %v1427_v1 }
 0x352   : > { %v657_v3 = vpop.permute.xlu1 %656 }
 0x353   : > { %1353 = vpow2.f32 %v581_v2  ;;  %v662_v4 = vsel %vm612_vm3, %v657_v3, 0 }
 0x354   : > { %1248 = vmatpush3.bf16.msra.mxu0 %v662_v4 }
 0x355   : > { %v1350_v5 = vpop.eup %1349  ;;  %1259 = vmatprep.subr.bf16.mxu0 %v1427_v1 }
 0x356   : > { %v586_v6 = vsel %vm361_vm2, %v1350_v5, 0.0 }
 0x357   : > { %587 = vadd.xlane.f32.xlu1 %v586_v6 }
 0x359   : > { %v1352_v7 = vpop.eup %1351 }
 0x35a   : > { %v589_v8 = vsel %vm361_vm2, %v1352_v7, 0.0 }
 0x35b   : > { %590 = vadd.xlane.f32.xlu0 %v589_v8 }
 0x35d   : > { %v1354_v9 = vpop.eup %1353 }
 0x35e   : > { %v592_v10 = vsel %vm361_vm2, %v1354_v9, 0.0 }
 0x35f   : > { %593 = vadd.xlane.f32.xlu1 %v592_v10 }
 0x370   : > { %704 = vrot.lane.b32.xlu1 %v1553_v18, %s1433_s14 }
 0x371   : > { %752 = vrot.lane.b32.xlu0 %v1551_v17, %s1433_s14  ;;  %s1369_s14 = scalar_lea.vmem %s1368_s13, 256 }
 0x372   : > { %p1371_p1 = scmp.lt.s32.totalorder %s1369_s14, %s1363_s8 }
 0x374   : > { %p1372_p2 = por %p1371_p1, %p1370_p0 }
 0x376   : > { %p1373_p3 = pnand %p1372_p2, %p1366_p13 }
 0x37f   : > { %v585_v11 = vpop.xlane.xlu0 %584 }
 0x380   : > { %1355 = vrcp.f32 %v585_v11 }
 0x38a   : > { %v1356_v12 = vpop.eup %1355 }
 0x38b   : > { %v596_v13 = vmul.f32 %v1356_v12, %v1348_v53 }
 0x38d   : > { %v603_v14 = vpack.c.bf16 %v596_v13, %v596_v13 }
 0x38f   : > { %1244 = vmatmul.mubr.msk.bf16.vlgmr.msra.gmra.mrb[8].mxu1 %vm361_vm2, %v603_v14 }
 0x390   : > { %1255 = vmatprep.mubr.msk.bf16.mxu1 %vm1428_vm0, %v1427_v1 }
 0x3e4   : > { %v588_v15 = vpop.xlane.xlu1 %587 }
 0x3e5   : > { %1357 = vrcp.f32 %v588_v15 }
 0x3e8   : > { %v591_v16 = vpop.xlane.xlu0 %590 }
 0x3e9   : > { %1359 = vrcp.f32 %v591_v16  ;;  %v1170_v16 = vld [vmem:[%s1714_s4] ss:$0 sm:$0xff] }
 0x3ec   : > { %v594_v19 = vpop.xlane.xlu1 %593  ;;  %v753_v17 = vpop.permute.xlu0 %752 }
 0x3ed   : > { %1361 = vrcp.f32 %v594_v19  ;;  %v758_v27 = vsel %vm612_vm3, %v753_v17, 0 }
 0x3ef   : > { %v1358_v18 = vpop.eup %1357 }
 0x3f0   : > { %v598_v20 = vmul.f32 %v1358_v18, %v1350_v5  ;;  %v705_v21 = vpop.permute.xlu1 %704 }
 0x3f1   : > { %v710_v22 = vsel %vm612_vm3, %v705_v21, 0 }
 0x3f2   : > { %1254 = vmatpush3.bf16.msra.mxu1 %v710_v22  ;;  %v604_v23 = vpack.c.bf16 %v598_v20, %v598_v20 }
 0x3f3   : > { %v1360_v24 = vpop.eup %1359  ;;  %1265 = vmatprep.subr.bf16.mxu1 %v1427_v1 }
 0x3f4   : > { %v600_v26 = vmul.f32 %v1360_v24, %v1352_v7  ;;  %1250 = vmatmul.mubr.msk.bf16.vlgmr.msra.gmra.mrb[12].mxu0 %vm361_vm2, %v604_v23  ;;  %v1171_v23 = vld [vmem:[%s1716_s6] ss:$0 sm:$0xff] }
 0x3f5   : > { %1260 = vmatpush3.bf16.msra.mxu0 %v758_v27  ;;  %1261 = vmatprep.mubr.msk.bf16.mxu0 %vm1428_vm0, %v1427_v1 }
 0x3f6   : > { %v605_v28 = vpack.c.bf16 %v600_v26, %v600_v26  ;;  %1271 = vmatprep.subr.bf16.mxu0 %v1427_v1 }
 0x3f7   : > { %v1362_v30 = vpop.eup %1361 }
 0x3f8   : > { %v602_v32 = vmul.f32 %v1362_v30, %v1354_v9  ;;  %1256 = vmatmul.mubr.msk.bf16.vlgmr.msra.gmra.mrb[12].mxu1 %vm361_vm2, %v605_v28 }
 0x3f9   : > { %1266 = vmatpush3.bf16.msra.mxu1 %v812_v29  ;;  %1267 = vmatprep.mubr.msk.bf16.mxu1 %vm1428_vm0, %v1427_v1 }
 0x3fa   : > { %v606_v33 = vpack.c.bf16 %v602_v32, %v602_v32  ;;  %1277 = vmatprep.subr.bf16.mxu1 %v1427_v1 }
 0x3fc   : > { %1262 = vmatmul.mubr.msk.bf16.vlgmr.msra.gmra.mrb[16].mxu0 %vm361_vm2, %v606_v33 }
 0x3fd   : > { %1272 = vmatpush3.bf16.msra.mxu0 %v858_v34  ;;  %1273 = vmatprep.mubr.msk.bf16.mxu0 %vm1428_vm0, %v1427_v1 }
 0x3fe   : > { %1283 = vmatprep.subr.bf16.mxu0 %v1427_v1 }
 0x462   : > { %v650_v36 = vpop.f32.mrb[8].mxu1 }
 0x463   : > { %v800_v37 = vpack.c.bf16 %v650_v36, %v650_v36  ;;  %v1245_v38 = vpop.f32.mrb[9].mxu1 }
 0x464   : > { %v653_v40 = vpop.f32.mrb[10].mxu1 }
 0x465   : > { %v1246_v41 = vpop.f32.mrb[11].mxu1  ;;  %1268 = vmatmul.mubr.msk.bf16.vlgmr.msra.gmra.mrb[16].mxu1 %vm361_vm2, %v800_v37 }
 0x466   : > { %1278 = vmatpush3.bf16.msra.mxu1 %v904_v39  ;;  %1279 = vmatprep.mubr.msk.bf16.mxu1 %vm1428_vm0, %v1427_v1 }
 0x467   : > { %1289 = vmatprep.subr.bf16.mxu1 %v1427_v1 }
 0x4c7   : > { %v698_v43 = vpop.f32.mrb[12].mxu0 }
 0x4c8   : > { %v801_v44 = vpack.c.bf16 %v698_v43, %v698_v43  ;;  %v1251_v45 = vpop.f32.mrb[13].mxu0 }
 0x4c9   : > { %v701_v47 = vpop.f32.mrb[14].mxu0 }
 0x4ca   : > { %v1252_v48 = vpop.f32.mrb[15].mxu0  ;;  %1274 = vmatmul.mubr.msk.bf16.vlgmr.msra.gmra.mrb[20].mxu0 %vm361_vm2, %v801_v44 }
 0x4cb   : > { %v746_v49 = vpop.f32.mrb[12].mxu1  ;;  %1284 = vmatpush3.bf16.msra.mxu0 %v950_v46  ;;  %1285 = vmatprep.mubr.msk.bf16.mxu0 %vm1428_vm0, %v1427_v1 }
 0x4cc   : > { %v802_v50 = vpack.c.bf16 %v746_v49, %v746_v49  ;;  %v1257_v51 = vpop.f32.mrb[13].mxu1 }
 0x4cd   : > { %v749_v52 = vpop.f32.mrb[14].mxu1 }
 0x4ce   : > { %v1258_v53 = vpop.f32.mrb[15].mxu1  ;;  %1280 = vmatmul.mubr.msk.bf16.vlgmr.msra.gmra.mrb[20].mxu1 %vm361_vm2, %v802_v50 }
 0x4cf   : > { %v794_v54 = vpop.f32.mrb[16].mxu0  ;;  %1293 = vmatprep.mubr.msk.bf16.mxu1 %vm1428_vm0, %v1427_v1  ;;  %1290 = vmatpush3.bf16.msra.mxu1 %v1345_v59 }
 0x4d0   : > { %v803_v55 = vpack.c.bf16 %v794_v54, %v794_v54  ;;  %v1263_v56 = vpop.f32.mrb[17].mxu0  ;;  %1291 = vmatprep.subr.bf16.mxu1 %v1427_v1 }
 0x4d1   : > { %v797_v57 = vpop.f32.mrb[18].mxu0 }
 0x4d2   : > { %v1264_v58 = vpop.f32.mrb[19].mxu0  ;;  %1286 = vmatmul.mubr.msk.bf16.vlgmr.msra.gmra.mrb[24].mxu0 %vm361_vm2, %v803_v55 }
 0x4d3   : > { %1292 = vmatpush3.bf16.msra.mxu1 %v1346_v60 }
 0x538   : > { %v848_v61 = vpop.f32.mrb[16].mxu1 }
 0x539   : > { %v1269_v62 = vpop.f32.mrb[17].mxu1  ;;  %v992_v3 = vsel %vm300_vm1, %v848_v61, 0.0 }
 0x53a   : > { %v851_v63 = vpop.f32.mrb[18].mxu1 }
 0x53b   : > { %v1270_v0 = vpop.f32.mrb[19].mxu1 }
 0x59d   : > { %v894_v2 = vpop.f32.mrb[20].mxu0 }
 0x59e   : > { %v993_v4 = vsel %vm300_vm1, %v894_v2, 0.0  ;;  %v1275_v5 = vpop.f32.mrb[21].mxu0 }
 0x59f   : > { %v994_v6 = vadd.f32 %v993_v4, %v992_v3  ;;  %v897_v7 = vpop.f32.mrb[22].mxu0 }
 0x5a0   : > { %v1276_v8 = vpop.f32.mrb[23].mxu0 }
 0x5a1   : > { %v940_v9 = vpop.f32.mrb[20].mxu1 }
 0x5a2   : > { %v995_v1 = vsel %vm300_vm1, %v940_v9, 0.0  ;;  %v1281_v10 = vpop.f32.mrb[21].mxu1 }
 0x5a3   : > { %v996_v11 = vadd.f32 %v995_v1, %v994_v6  ;;  %v943_v12 = vpop.f32.mrb[22].mxu1 }
 0x5a4   : > { %v1282_v13 = vpop.f32.mrb[23].mxu1 }
 0x5a5   : > { %v986_v14 = vpop.f32.mrb[24].mxu0 }
 0x5a6   : > { %v997_v15 = vsel %vm300_vm1, %v986_v14, 0.0  ;;  %v1287_v19 = vpop.f32.mrb[25].mxu0 }
 0x5a7   : > { %v998_v18 = vadd.f32 %v997_v15, %v996_v11  ;;  %v989_v20 = vpop.f32.mrb[26].mxu0 }
 0x5a8   : > { %v1288_v21 = vpop.f32.mrb[27].mxu0 }
 0x5a9   : > { %v1006_v17 = vadd.f32 %v1170_v16, %v998_v18 }
 0x5ab   : > { %v1007_v22 = vpack.c.bf16 %v1006_v17, %v1006_v17 }
 0x5ad   : > { %1294 = vmatmul.mubr.msk.bf16.vlgmr.msra.gmra.mrb[24].mxu1 %vm300_vm1, %v1007_v22 }
 0x680   : > { %v1068_v24 = vpop.f32.mrb[24].mxu1 }
 0x681   : > { %v1069_v25 = vadd.f32 %v1171_v23, %v1068_v24  ;;  %v1295_v26 = vpop.f32.mrb[25].mxu1 }
 0x682   : > { %v1071_v27 = vpop.f32.mrb[26].mxu1 }
 0x683   : > { %v1296_v28 = vpop.f32.mrb[27].mxu1  ;;  %1074 = vst.msk [vmem:[%s269_s20] sm:$0xff] %vm300_vm1, %v1069_v25 }
 0x684   : > { %1376 = shalt.err (!%p1373_p3)
}
 0x685   : > { %s1377_s15 = scalar_lea.hbm %s1667_s29, 128  ;;  %s1381_s18 = scalar_lea.hbm %s1717_s7, 256 }
 0x686   : > { %p1378_p4 = scmp.ne.s32.totalorder %s1667_s29, %s1377_s15  ;;  %p1382_p9 = scmp.lt.u32.totalorder %s1667_s29, %s1717_s7 }
 0x687   : > { %p1383_p10 = scmp.lt.u32.totalorder %s1381_s18, %s1377_s15  ;;  %p1385_p12 = scmp.lt.u32.totalorder %s1377_s15, %s1667_s29 }
 0x688   : > { %p1379_p7 = pnand %p1378_p4, %p1513_p5 }
 0x689   : > { %p1384_p11 = por %p1383_p10, %p1382_p9 }
 0x68a   : > { %p1380_p8 = pneg %p1379_p7 }
 0x68b   : > { %p1386_p13 = por %p1385_p12, %p1384_p11 }
 0x68d   : > { %p1387_p0 = pnand %p1386_p13, %p1380_p8 }
 0x68f   : > { %1390 = shalt.err (!%p1387_p0)
}
 0x690   : > { %1297 = dma.vmem_to_hbm [thread:$0]  (%p1513_p5), %s1669_s21, 128, %s1667_s29, %s1076_s28  }
 0x691 PF: > { %p1303_p1 = scmp.ge.s32.totalorder %s1425_s27, 2  ;;  %s1101_s22 = sand.u32 1, %s1413_s24  }
 0x692   : > { %s1102_s23 = scalar_lea.sflag [#allocation3], %s1101_s22 }
 0x693   : > { %p1300_p2 = pnand %p1303_p1, %p1517_p6 }
 0x695   : > { %1408 = dma.done.wait (!%p1300_p2), %s1102_s23, 128  }
 0x696   : > { %1410 = vsyncadd (!%p1300_p2), %s1102_s23, 4294967168  ;;  %p17_p3 = scmp.ge.s32.totalorder %s1500_s30, 4   ;;  %s1720_s24 = smov %s1417_s25 }
 0x697   : > { %s1721_s25 = smov %s1421_s26  ;;  %s1722_s26 = smov %s1511_s10 }
 0x698   : > { %s1723_s27 = smov %s1500_s30  ;;  %19 = sbr.rel (!%p17_p3) target bundleno = 3 (0x3), region = 83 }
 0x69f   :  { %1107 = vsyncpa [#allocation3], 1 }
 0x6a0   :  { %1109 = vsyncpa [#allocation3 + $0x1], 1 }

</bundles_post_ra>
